<compile_context>
chip_gen: v7x
topology: tpu7x:2x2x1
jax: 0.10.0
libtpu: 0.0.40
codegen_flags: <defaults>
</compile_context>

<pallas_src>
import functools

import jax
import jax.numpy as jnp
import numpy as np
from jax.experimental import pallas as pl
from jax.experimental.pallas import tpu as pltpu

EPS = 1e-5  # PyTorch BatchNorm1d default eps


def _resnet_block_kernel(pos_ref, xe_ref, xo_ref, wl_ref, w1_ref, w2_ref,
                         gl_ref, btl_ref, g1_ref, bt1_ref, g2_ref, bt2_ref,
                         o_ref, *, l_out, k_taps):
    rows = xe_ref.shape[1]                       # N * L_out (lane axis)
    pad = (k_taps - 1) // 2                      # 8
    inv_rows = 1.0 / float(rows)
    pos = pos_ref[...]                           # (1, rows) int32: t = lane % L_out

    def shifted(v, d):
        # out[:, n*L_out + t] = v[:, n*L_out + t + d], zero where t+d outside
        # [0, L_out) -- i.e. the convolution's zero padding, and no leakage
        # across per-batch boundaries.
        if d == 0:
            return v
        r = pltpu.roll(v, shift=(-d) % rows, axis=1)          # XLU rotate
        valid = jnp.logical_and(pos >= -d, pos < l_out - d)   # (1, rows)
        return jnp.where(valid, r, 0.0)                       # VPU select

    def batch_norm(y, g_ref, b_ref):
        # training-mode BN fused to per-channel scale/shift (two-pass variance)
        mean = jnp.sum(y, axis=1, keepdims=True) * inv_rows   # (C, 1)
        yc = y - mean
        var = jnp.sum(yc * yc, axis=1, keepdims=True) * inv_rows
        scale = g_ref[...] * jax.lax.rsqrt(var + EPS)
        return yc * scale + b_ref[...]

    xe = xe_ref[...]                             # (C_in, rows)  x[.., 2t]
    xo = xo_ref[...]                             # (C_in, rows)  x[.., 2t+1]

    # ---- left branch: 1x1 / stride-2 conv == matmul against the even phase
    left = batch_norm(
        jnp.dot(wl_ref[...], xe, preferred_element_type=jnp.float32),
        gl_ref, btl_ref)                                        # (C_out, rows)

    # ---- right conv1 (k=17, stride 2, pad 8): tap accumulation over phases
    c1 = w1_ref.shape[1]
    y1 = jnp.zeros((c1, rows), jnp.float32)
    for k in range(k_taps):
        if k % 2 == 0:
            xs = shifted(xe, k // 2 - pad // 2)   # even tap -> even phase
        else:
            xs = shifted(xo, (k - pad - 1) // 2)  # odd tap  -> odd phase
        y1 = y1 + jnp.dot(w1_ref[k], xs, preferred_element_type=jnp.float32)

    h = jnp.maximum(batch_norm(y1, g1_ref, bt1_ref), 0.0)       # (C_in, rows)

    # ---- right conv2 (k=17, stride 1, pad 8): tap accumulation on resident h
    c2 = w2_ref.shape[1]
    y2 = jnp.zeros((c2, rows), jnp.float32)
    for k in range(k_taps):
        y2 = y2 + jnp.dot(w2_ref[k], shifted(h, k - pad),
                          preferred_element_type=jnp.float32)

    right = batch_norm(y2, g2_ref, bt2_ref)                     # (C_out, rows)

    o_ref[...] = jnp.maximum(left + right, 0.0).astype(o_ref.dtype)


def resnet_block_forward(x, params):
    """x: (N, C_in, L) float32 (PyTorch Conv1d layout). Returns (N, C_out, L//2)."""
    (wl, bl, gl, btl, w1, b1, g1, bt1, w2, b2, g2, bt2) = params
    del bl, b1, b2  # per-channel conv biases are exactly cancelled by training-mode BN
    n_batch, c_in, length = x.shape
    c_out = wl.shape[0]
    k_taps = w1.shape[2]                 # 17
    assert length % 2 == 0, "kernel assumes even input length"
    l_out = length // 2
    rows = n_batch * l_out

    # ---- wrapper glue (1x the input bytes): even/odd phase split, channel-major
    xf = x.astype(jnp.float32)
    xe = jnp.transpose(xf[:, :, 0::2], (1, 0, 2)).reshape(c_in, rows)
    xo = jnp.transpose(xf[:, :, 1::2], (1, 0, 2)).reshape(c_in, rows)
    # per-lane local position t (for per-batch halo masking of rolled taps)
    pos = jnp.broadcast_to(jnp.arange(l_out, dtype=jnp.int32)[None, :],
                           (n_batch, l_out)).reshape(1, rows)

    # ---- weights: per-tap (C_out, C_in) matrices, indexed statically in-kernel
    wl2 = wl[:, :, 0].astype(jnp.float32)                       # (C_out, C_in)
    w1t = jnp.transpose(w1, (2, 0, 1)).astype(jnp.float32)      # (K, C_in, C_in)
    w2t = jnp.transpose(w2, (2, 0, 1)).astype(jnp.float32)      # (K, C_out, C_in)
    col = lambda v: v.reshape(-1, 1).astype(jnp.float32)

    kernel = functools.partial(_resnet_block_kernel, l_out=l_out, k_taps=k_taps)
    vmem = pl.BlockSpec(memory_space=pltpu.MemorySpace.VMEM)
    out_cr = pl.pallas_call(
        kernel,
        out_shape=jax.ShapeDtypeStruct((c_out, rows), jnp.float32),
        in_specs=[vmem] * 12,
        out_specs=vmem,
    )(pos, xe, xo, wl2, w1t, w2t,
      col(gl), col(btl), col(g1), col(bt1), col(g2), col(bt2))

    # lane-dense (C_out, N*L_out) -> PyTorch (N, C_out, L_out)
    return jnp.transpose(out_cr.reshape(c_out, n_batch, l_out), (1, 0, 2))


# ---------------- pure-JAX reference (for correctness check) -----------------
def _conv1d_ref(x, w, b, stride, pad):
    y = jax.lax.conv_general_dilated(
        x, w, window_strides=(stride,), padding=[(pad, pad)],
        dimension_numbers=('NCH', 'OIH', 'NCH'))
    return y + b[None, :, None]


def _bn_ref(x, g, b):
    mean = jnp.mean(x, axis=(0, 2), keepdims=True)
    var = jnp.mean((x - mean) ** 2, axis=(0, 2), keepdims=True)
    return g[None, :, None] * (x - mean) / jnp.sqrt(var + EPS) + b[None, :, None]


def resnet_block_reference(x, params):
    (wl, bl, gl, btl, w1, b1, g1, bt1, w2, b2, g2, bt2) = params
    left = _bn_ref(_conv1d_ref(x, wl, bl, 2, 0), gl, btl)
    r = jax.nn.relu(_bn_ref(_conv1d_ref(x, w1, b1, 2, 8), g1, bt1))
    right = _bn_ref(_conv1d_ref(r, w2, b2, 1, 8), g2, bt2)
    return jax.nn.relu(left + right)


if __name__ == "__main__":
    # small but lane-aligned demo shape: L_out = 128 lanes per batch element
    N, C_in, C_out, L = 2, 4, 8, 256
    key = jax.random.PRNGKey(0)
    ks = jax.random.split(key, 13)
    nrm = lambda k, s, sc: sc * jax.random.normal(k, s, jnp.float32)

    wl = nrm(ks[0], (C_out, C_in, 1), 0.5)    # left Conv1d weight
    bl = nrm(ks[1], (C_out,), 0.1)
    w1 = nrm(ks[2], (C_in, C_in, 17), 0.2)    # right Conv1d #1 weight
    b1 = nrm(ks[3], (C_in,), 0.1)
    w2 = nrm(ks[4], (C_out, C_in, 17), 0.2)   # right Conv1d #2 weight
    b2 = nrm(ks[5], (C_out,), 0.1)
    gl = 1.0 + nrm(ks[6], (C_out,), 0.1)      # BN affine params
    btl = nrm(ks[7], (C_out,), 0.1)
    g1 = 1.0 + nrm(ks[8], (C_in,), 0.1)
    bt1 = nrm(ks[9], (C_in,), 0.1)
    g2 = 1.0 + nrm(ks[10], (C_out,), 0.1)
    bt2 = nrm(ks[11], (C_out,), 0.1)
    x = jax.random.normal(ks[12], (N, C_in, L), jnp.float32)

    params = (wl, bl, gl, btl, w1, b1, g1, bt1, w2, b2, g2, bt2)

    out = jax.jit(resnet_block_forward)(x, params)
    out = jax.block_until_ready(out)
    assert out.shape == (N, C_out, L // 2)

    ref = resnet_block_reference(x, params)
    np.testing.assert_allclose(np.asarray(out), np.asarray(ref),
                               rtol=1e-4, atol=1e-4)
    print("KERNEL_OK")
</pallas_src>

<mosaic_0001>
module attributes {stable_mosaic.version = 11 : i64} {
  func.func @_resnet_block_kernel(%arg0: memref<1x256xi32, #tpu.memory_space<vmem>>, %arg1: memref<4x256xf32, #tpu.memory_space<vmem>>, %arg2: memref<4x256xf32, #tpu.memory_space<vmem>>, %arg3: memref<8x4xf32, #tpu.memory_space<vmem>>, %arg4: memref<17x4x4xf32, #tpu.memory_space<vmem>>, %arg5: memref<17x8x4xf32, #tpu.memory_space<vmem>>, %arg6: memref<8x1xf32, #tpu.memory_space<vmem>>, %arg7: memref<8x1xf32, #tpu.memory_space<vmem>>, %arg8: memref<4x1xf32, #tpu.memory_space<vmem>>, %arg9: memref<4x1xf32, #tpu.memory_space<vmem>>, %arg10: memref<8x1xf32, #tpu.memory_space<vmem>>, %arg11: memref<8x1xf32, #tpu.memory_space<vmem>>, %arg12: memref<8x256xf32, #tpu.memory_space<vmem>>) attributes {dimension_semantics = [], scalar_prefetch = 0 : i64, scratch_operands = 0 : i64, tpu.core_type = #tpu.core_type<tc>} {
    %c0 = arith.constant 0 : index
    %c0_0 = arith.constant 0 : index
    %0 = vector.load %arg0[%c0, %c0_0] : memref<1x256xi32, #tpu.memory_space<vmem>>, vector<1x256xi32>
    %c0_1 = arith.constant 0 : index
    %c0_2 = arith.constant 0 : index
    %1 = vector.load %arg1[%c0_1, %c0_2] : memref<4x256xf32, #tpu.memory_space<vmem>>, vector<4x256xf32>
    %c0_3 = arith.constant 0 : index
    %c0_4 = arith.constant 0 : index
    %2 = vector.load %arg2[%c0_3, %c0_4] : memref<4x256xf32, #tpu.memory_space<vmem>>, vector<4x256xf32>
    %c0_5 = arith.constant 0 : index
    %c0_6 = arith.constant 0 : index
    %3 = vector.load %arg3[%c0_5, %c0_6] : memref<8x4xf32, #tpu.memory_space<vmem>>, vector<8x4xf32>
    %cst = arith.constant dense<0.000000e+00> : vector<8x256xf32>
    %4 = tpu.matmul %3, %1, %cst {dimension_numbers = #tpu.dot_dimension_numbers<[1], [0], [0], [1], [0, 0, 1, 1], [], []>} : vector<8x4xf32>, vector<4x256xf32>, vector<8x256xf32> -> vector<8x256xf32>
    %cst_7 = arith.constant dense<0.000000e+00> : vector<8xf32>
    %5 = vector.multi_reduction <add>, %4, %cst_7 [1] : vector<8x256xf32> to vector<8xf32>
    %6 = vector.shape_cast %5 : vector<8xf32> to vector<8x1xf32>
    %cst_8 = arith.constant 3.906250e-03 : f32
    %7 = vector.broadcast %cst_8 : f32 to vector<8x1xf32>
    %8 = arith.mulf %6, %7 : vector<8x1xf32>
    %9 = vector.broadcast %8 : vector<8x1xf32> to vector<8x256xf32>
    %10 = arith.subf %4, %9 : vector<8x256xf32>
    %11 = arith.mulf %10, %10 : vector<8x256xf32>
    %cst_9 = arith.constant dense<0.000000e+00> : vector<8xf32>
    %12 = vector.multi_reduction <add>, %11, %cst_9 [1] : vector<8x256xf32> to vector<8xf32>
    %13 = vector.shape_cast %12 : vector<8xf32> to vector<8x1xf32>
    %cst_10 = arith.constant 3.906250e-03 : f32
    %14 = vector.broadcast %cst_10 : f32 to vector<8x1xf32>
    %15 = arith.mulf %13, %14 : vector<8x1xf32>
    %c0_11 = arith.constant 0 : index
    %c0_12 = arith.constant 0 : index
    %16 = vector.load %arg6[%c0_11, %c0_12] : memref<8x1xf32, #tpu.memory_space<vmem>>, vector<8x1xf32>
    %cst_13 = arith.constant 9.99999974E-6 : f32
    %17 = vector.broadcast %cst_13 : f32 to vector<8x1xf32>
    %18 = arith.addf %15, %17 : vector<8x1xf32>
    %19 = math.rsqrt %18 : vector<8x1xf32>
    %20 = arith.mulf %16, %19 : vector<8x1xf32>
    %21 = vector.broadcast %20 : vector<8x1xf32> to vector<8x256xf32>
    %22 = arith.mulf %10, %21 : vector<8x256xf32>
    %c0_14 = arith.constant 0 : index
    %c0_15 = arith.constant 0 : index
    %23 = vector.load %arg7[%c0_14, %c0_15] : memref<8x1xf32, #tpu.memory_space<vmem>>, vector<8x1xf32>
    %24 = vector.broadcast %23 : vector<8x1xf32> to vector<8x256xf32>
    %25 = arith.addf %22, %24 : vector<8x256xf32>
    %cst_16 = arith.constant 0.000000e+00 : f32
    %26 = vector.broadcast %cst_16 : f32 to vector<4x256xf32>
    %c4_i32 = arith.constant 4 : i32
    %27 = tpu.dynamic_rotate %1 by %c4_i32 dim 1 : vector<4x256xf32>, i32 -> vector<4x256xf32>
    %c4_i32_17 = arith.constant 4 : i32
    %28 = vector.broadcast %c4_i32_17 : i32 to vector<1x256xi32>
    %29 = arith.cmpi sge, %0, %28 : vector<1x256xi32>
    %c132_i32 = arith.constant 132 : i32
    %30 = vector.broadcast %c132_i32 : i32 to vector<1x256xi32>
    %31 = arith.cmpi slt, %0, %30 : vector<1x256xi32>
    %32 = arith.andi %29, %31 : vector<1x256xi1>
    %cst_18 = arith.constant 0.000000e+00 : f32
    %33 = vector.shape_cast %32 : vector<1x256xi1> to vector<1x256xi1>
    %34 = vector.broadcast %33 : vector<1x256xi1> to vector<4x256xi1>
    %35 = vector.broadcast %cst_18 : f32 to vector<4x256xf32>
    %36 = arith.select %34, %27, %35 : vector<4x256xi1>, vector<4x256xf32>
    %c0_19 = arith.constant 0 : index
    %c0_20 = arith.constant 0 : index
    %c0_21 = arith.constant 0 : index
    %37 = vector.load %arg4[%c0_19, %c0_20, %c0_21] : memref<17x4x4xf32, #tpu.memory_space<vmem>>, vector<1x4x4xf32>
    %38 = vector.shape_cast %37 : vector<1x4x4xf32> to vector<4x4xf32>
    %cst_22 = arith.constant dense<0.000000e+00> : vector<4x256xf32>
    %39 = tpu.matmul %38, %36, %cst_22 {dimension_numbers = #tpu.dot_dimension_numbers<[1], [0], [0], [1], [0, 0, 1, 1], [], []>} : vector<4x4xf32>, vector<4x256xf32>, vector<4x256xf32> -> vector<4x256xf32>
    %40 = arith.addf %26, %39 : vector<4x256xf32>
    %c4_i32_23 = arith.constant 4 : i32
    %41 = tpu.dynamic_rotate %2 by %c4_i32_23 dim 1 : vector<4x256xf32>, i32 -> vector<4x256xf32>
    %c4_i32_24 = arith.constant 4 : i32
    %42 = vector.broadcast %c4_i32_24 : i32 to vector<1x256xi32>
    %43 = arith.cmpi sge, %0, %42 : vector<1x256xi32>
    %c132_i32_25 = arith.constant 132 : i32
    %44 = vector.broadcast %c132_i32_25 : i32 to vector<1x256xi32>
    %45 = arith.cmpi slt, %0, %44 : vector<1x256xi32>
    %46 = arith.andi %43, %45 : vector<1x256xi1>
    %cst_26 = arith.constant 0.000000e+00 : f32
    %47 = vector.shape_cast %46 : vector<1x256xi1> to vector<1x256xi1>
    %48 = vector.broadcast %47 : vector<1x256xi1> to vector<4x256xi1>
    %49 = vector.broadcast %cst_26 : f32 to vector<4x256xf32>
    %50 = arith.select %48, %41, %49 : vector<4x256xi1>, vector<4x256xf32>
    %c1 = arith.constant 1 : index
    %c0_27 = arith.constant 0 : index
    %c0_28 = arith.constant 0 : index
    %51 = vector.load %arg4[%c1, %c0_27, %c0_28] : memref<17x4x4xf32, #tpu.memory_space<vmem>>, vector<1x4x4xf32>
    %52 = vector.shape_cast %51 : vector<1x4x4xf32> to vector<4x4xf32>
    %cst_29 = arith.constant dense<0.000000e+00> : vector<4x256xf32>
    %53 = tpu.matmul %52, %50, %cst_29 {dimension_numbers = #tpu.dot_dimension_numbers<[1], [0], [0], [1], [0, 0, 1, 1], [], []>} : vector<4x4xf32>, vector<4x256xf32>, vector<4x256xf32> -> vector<4x256xf32>
    %54 = arith.addf %40, %53 : vector<4x256xf32>
    %c3_i32 = arith.constant 3 : i32
    %55 = tpu.dynamic_rotate %1 by %c3_i32 dim 1 : vector<4x256xf32>, i32 -> vector<4x256xf32>
    %c3_i32_30 = arith.constant 3 : i32
    %56 = vector.broadcast %c3_i32_30 : i32 to vector<1x256xi32>
    %57 = arith.cmpi sge, %0, %56 : vector<1x256xi32>
    %c131_i32 = arith.constant 131 : i32
    %58 = vector.broadcast %c131_i32 : i32 to vector<1x256xi32>
    %59 = arith.cmpi slt, %0, %58 : vector<1x256xi32>
    %60 = arith.andi %57, %59 : vector<1x256xi1>
    %cst_31 = arith.constant 0.000000e+00 : f32
    %61 = vector.shape_cast %60 : vector<1x256xi1> to vector<1x256xi1>
    %62 = vector.broadcast %61 : vector<1x256xi1> to vector<4x256xi1>
    %63 = vector.broadcast %cst_31 : f32 to vector<4x256xf32>
    %64 = arith.select %62, %55, %63 : vector<4x256xi1>, vector<4x256xf32>
    %c2 = arith.constant 2 : index
    %c0_32 = arith.constant 0 : index
    %c0_33 = arith.constant 0 : index
    %65 = vector.load %arg4[%c2, %c0_32, %c0_33] : memref<17x4x4xf32, #tpu.memory_space<vmem>>, vector<1x4x4xf32>
    %66 = vector.shape_cast %65 : vector<1x4x4xf32> to vector<4x4xf32>
    %cst_34 = arith.constant dense<0.000000e+00> : vector<4x256xf32>
    %67 = tpu.matmul %66, %64, %cst_34 {dimension_numbers = #tpu.dot_dimension_numbers<[1], [0], [0], [1], [0, 0, 1, 1], [], []>} : vector<4x4xf32>, vector<4x256xf32>, vector<4x256xf32> -> vector<4x256xf32>
    %68 = arith.addf %54, %67 : vector<4x256xf32>
    %c3_i32_35 = arith.constant 3 : i32
    %69 = tpu.dynamic_rotate %2 by %c3_i32_35 dim 1 : vector<4x256xf32>, i32 -> vector<4x256xf32>
    %c3_i32_36 = arith.constant 3 : i32
    %70 = vector.broadcast %c3_i32_36 : i32 to vector<1x256xi32>
    %71 = arith.cmpi sge, %0, %70 : vector<1x256xi32>
    %c131_i32_37 = arith.constant 131 : i32
    %72 = vector.broadcast %c131_i32_37 : i32 to vector<1x256xi32>
    %73 = arith.cmpi slt, %0, %72 : vector<1x256xi32>
    %74 = arith.andi %71, %73 : vector<1x256xi1>
    %cst_38 = arith.constant 0.000000e+00 : f32
    %75 = vector.shape_cast %74 : vector<1x256xi1> to vector<1x256xi1>
    %76 = vector.broadcast %75 : vector<1x256xi1> to vector<4x256xi1>
    %77 = vector.broadcast %cst_38 : f32 to vector<4x256xf32>
    %78 = arith.select %76, %69, %77 : vector<4x256xi1>, vector<4x256xf32>
    %c3 = arith.constant 3 : index
    %c0_39 = arith.constant 0 : index
    %c0_40 = arith.constant 0 : index
    %79 = vector.load %arg4[%c3, %c0_39, %c0_40] : memref<17x4x4xf32, #tpu.memory_space<vmem>>, vector<1x4x4xf32>
    %80 = vector.shape_cast %79 : vector<1x4x4xf32> to vector<4x4xf32>
    %cst_41 = arith.constant dense<0.000000e+00> : vector<4x256xf32>
    %81 = tpu.matmul %80, %78, %cst_41 {dimension_numbers = #tpu.dot_dimension_numbers<[1], [0], [0], [1], [0, 0, 1, 1], [], []>} : vector<4x4xf32>, vector<4x256xf32>, vector<4x256xf32> -> vector<4x256xf32>
    %82 = arith.addf %68, %81 : vector<4x256xf32>
    %c2_i32 = arith.constant 2 : i32
    %83 = tpu.dynamic_rotate %1 by %c2_i32 dim 1 : vector<4x256xf32>, i32 -> vector<4x256xf32>
    %c2_i32_42 = arith.constant 2 : i32
    %84 = vector.broadcast %c2_i32_42 : i32 to vector<1x256xi32>
    %85 = arith.cmpi sge, %0, %84 : vector<1x256xi32>
    %c130_i32 = arith.constant 130 : i32
    %86 = vector.broadcast %c130_i32 : i32 to vector<1x256xi32>
    %87 = arith.cmpi slt, %0, %86 : vector<1x256xi32>
    %88 = arith.andi %85, %87 : vector<1x256xi1>
    %cst_43 = arith.constant 0.000000e+00 : f32
    %89 = vector.shape_cast %88 : vector<1x256xi1> to vector<1x256xi1>
    %90 = vector.broadcast %89 : vector<1x256xi1> to vector<4x256xi1>
    %91 = vector.broadcast %cst_43 : f32 to vector<4x256xf32>
    %92 = arith.select %90, %83, %91 : vector<4x256xi1>, vector<4x256xf32>
    %c4 = arith.constant 4 : index
    %c0_44 = arith.constant 0 : index
    %c0_45 = arith.constant 0 : index
    %93 = vector.load %arg4[%c4, %c0_44, %c0_45] : memref<17x4x4xf32, #tpu.memory_space<vmem>>, vector<1x4x4xf32>
    %94 = vector.shape_cast %93 : vector<1x4x4xf32> to vector<4x4xf32>
    %cst_46 = arith.constant dense<0.000000e+00> : vector<4x256xf32>
    %95 = tpu.matmul %94, %92, %cst_46 {dimension_numbers = #tpu.dot_dimension_numbers<[1], [0], [0], [1], [0, 0, 1, 1], [], []>} : vector<4x4xf32>, vector<4x256xf32>, vector<4x256xf32> -> vector<4x256xf32>
    %96 = arith.addf %82, %95 : vector<4x256xf32>
    %c2_i32_47 = arith.constant 2 : i32
    %97 = tpu.dynamic_rotate %2 by %c2_i32_47 dim 1 : vector<4x256xf32>, i32 -> vector<4x256xf32>
    %c2_i32_48 = arith.constant 2 : i32
    %98 = vector.broadcast %c2_i32_48 : i32 to vector<1x256xi32>
    %99 = arith.cmpi sge, %0, %98 : vector<1x256xi32>
    %c130_i32_49 = arith.constant 130 : i32
    %100 = vector.broadcast %c130_i32_49 : i32 to vector<1x256xi32>
    %101 = arith.cmpi slt, %0, %100 : vector<1x256xi32>
    %102 = arith.andi %99, %101 : vector<1x256xi1>
    %cst_50 = arith.constant 0.000000e+00 : f32
    %103 = vector.shape_cast %102 : vector<1x256xi1> to vector<1x256xi1>
    %104 = vector.broadcast %103 : vector<1x256xi1> to vector<4x256xi1>
    %105 = vector.broadcast %cst_50 : f32 to vector<4x256xf32>
    %106 = arith.select %104, %97, %105 : vector<4x256xi1>, vector<4x256xf32>
    %c5 = arith.constant 5 : index
    %c0_51 = arith.constant 0 : index
    %c0_52 = arith.constant 0 : index
    %107 = vector.load %arg4[%c5, %c0_51, %c0_52] : memref<17x4x4xf32, #tpu.memory_space<vmem>>, vector<1x4x4xf32>
    %108 = vector.shape_cast %107 : vector<1x4x4xf32> to vector<4x4xf32>
    %cst_53 = arith.constant dense<0.000000e+00> : vector<4x256xf32>
    %109 = tpu.matmul %108, %106, %cst_53 {dimension_numbers = #tpu.dot_dimension_numbers<[1], [0], [0], [1], [0, 0, 1, 1], [], []>} : vector<4x4xf32>, vector<4x256xf32>, vector<4x256xf32> -> vector<4x256xf32>
    %110 = arith.addf %96, %109 : vector<4x256xf32>
    %c1_i32 = arith.constant 1 : i32
    %111 = tpu.dynamic_rotate %1 by %c1_i32 dim 1 : vector<4x256xf32>, i32 -> vector<4x256xf32>
    %c1_i32_54 = arith.constant 1 : i32
    %112 = vector.broadcast %c1_i32_54 : i32 to vector<1x256xi32>
    %113 = arith.cmpi sge, %0, %112 : vector<1x256xi32>
    %c129_i32 = arith.constant 129 : i32
    %114 = vector.broadcast %c129_i32 : i32 to vector<1x256xi32>
    %115 = arith.cmpi slt, %0, %114 : vector<1x256xi32>
    %116 = arith.andi %113, %115 : vector<1x256xi1>
    %cst_55 = arith.constant 0.000000e+00 : f32
    %117 = vector.shape_cast %116 : vector<1x256xi1> to vector<1x256xi1>
    %118 = vector.broadcast %117 : vector<1x256xi1> to vector<4x256xi1>
    %119 = vector.broadcast %cst_55 : f32 to vector<4x256xf32>
    %120 = arith.select %118, %111, %119 : vector<4x256xi1>, vector<4x256xf32>
    %c6 = arith.constant 6 : index
    %c0_56 = arith.constant 0 : index
    %c0_57 = arith.constant 0 : index
    %121 = vector.load %arg4[%c6, %c0_56, %c0_57] : memref<17x4x4xf32, #tpu.memory_space<vmem>>, vector<1x4x4xf32>
    %122 = vector.shape_cast %121 : vector<1x4x4xf32> to vector<4x4xf32>
    %cst_58 = arith.constant dense<0.000000e+00> : vector<4x256xf32>
    %123 = tpu.matmul %122, %120, %cst_58 {dimension_numbers = #tpu.dot_dimension_numbers<[1], [0], [0], [1], [0, 0, 1, 1], [], []>} : vector<4x4xf32>, vector<4x256xf32>, vector<4x256xf32> -> vector<4x256xf32>
    %124 = arith.addf %110, %123 : vector<4x256xf32>
    %c1_i32_59 = arith.constant 1 : i32
    %125 = tpu.dynamic_rotate %2 by %c1_i32_59 dim 1 : vector<4x256xf32>, i32 -> vector<4x256xf32>
    %c1_i32_60 = arith.constant 1 : i32
    %126 = vector.broadcast %c1_i32_60 : i32 to vector<1x256xi32>
    %127 = arith.cmpi sge, %0, %126 : vector<1x256xi32>
    %c129_i32_61 = arith.constant 129 : i32
    %128 = vector.broadcast %c129_i32_61 : i32 to vector<1x256xi32>
    %129 = arith.cmpi slt, %0, %128 : vector<1x256xi32>
    %130 = arith.andi %127, %129 : vector<1x256xi1>
    %cst_62 = arith.constant 0.000000e+00 : f32
    %131 = vector.shape_cast %130 : vector<1x256xi1> to vector<1x256xi1>
    %132 = vector.broadcast %131 : vector<1x256xi1> to vector<4x256xi1>
    %133 = vector.broadcast %cst_62 : f32 to vector<4x256xf32>
    %134 = arith.select %132, %125, %133 : vector<4x256xi1>, vector<4x256xf32>
    %c7 = arith.constant 7 : index
    %c0_63 = arith.constant 0 : index
    %c0_64 = arith.constant 0 : index
    %135 = vector.load %arg4[%c7, %c0_63, %c0_64] : memref<17x4x4xf32, #tpu.memory_space<vmem>>, vector<1x4x4xf32>
    %136 = vector.shape_cast %135 : vector<1x4x4xf32> to vector<4x4xf32>
    %cst_65 = arith.constant dense<0.000000e+00> : vector<4x256xf32>
    %137 = tpu.matmul %136, %134, %cst_65 {dimension_numbers = #tpu.dot_dimension_numbers<[1], [0], [0], [1], [0, 0, 1, 1], [], []>} : vector<4x4xf32>, vector<4x256xf32>, vector<4x256xf32> -> vector<4x256xf32>
    %138 = arith.addf %124, %137 : vector<4x256xf32>
    %c8 = arith.constant 8 : index
    %c0_66 = arith.constant 0 : index
    %c0_67 = arith.constant 0 : index
    %139 = vector.load %arg4[%c8, %c0_66, %c0_67] : memref<17x4x4xf32, #tpu.memory_space<vmem>>, vector<1x4x4xf32>
    %140 = vector.shape_cast %139 : vector<1x4x4xf32> to vector<4x4xf32>
    %cst_68 = arith.constant dense<0.000000e+00> : vector<4x256xf32>
    %141 = tpu.matmul %140, %1, %cst_68 {dimension_numbers = #tpu.dot_dimension_numbers<[1], [0], [0], [1], [0, 0, 1, 1], [], []>} : vector<4x4xf32>, vector<4x256xf32>, vector<4x256xf32> -> vector<4x256xf32>
    %142 = arith.addf %138, %141 : vector<4x256xf32>
    %c9 = arith.constant 9 : index
    %c0_69 = arith.constant 0 : index
    %c0_70 = arith.constant 0 : index
    %143 = vector.load %arg4[%c9, %c0_69, %c0_70] : memref<17x4x4xf32, #tpu.memory_space<vmem>>, vector<1x4x4xf32>
    %144 = vector.shape_cast %143 : vector<1x4x4xf32> to vector<4x4xf32>
    %cst_71 = arith.constant dense<0.000000e+00> : vector<4x256xf32>
    %145 = tpu.matmul %144, %2, %cst_71 {dimension_numbers = #tpu.dot_dimension_numbers<[1], [0], [0], [1], [0, 0, 1, 1], [], []>} : vector<4x4xf32>, vector<4x256xf32>, vector<4x256xf32> -> vector<4x256xf32>
    %146 = arith.addf %142, %145 : vector<4x256xf32>
    %c255_i32 = arith.constant 255 : i32
    %147 = tpu.dynamic_rotate %1 by %c255_i32 dim 1 : vector<4x256xf32>, i32 -> vector<4x256xf32>
    %c-1_i32 = arith.constant -1 : i32
    %148 = vector.broadcast %c-1_i32 : i32 to vector<1x256xi32>
    %149 = arith.cmpi sge, %0, %148 : vector<1x256xi32>
    %c127_i32 = arith.constant 127 : i32
    %150 = vector.broadcast %c127_i32 : i32 to vector<1x256xi32>
    %151 = arith.cmpi slt, %0, %150 : vector<1x256xi32>
    %152 = arith.andi %149, %151 : vector<1x256xi1>
    %cst_72 = arith.constant 0.000000e+00 : f32
    %153 = vector.shape_cast %152 : vector<1x256xi1> to vector<1x256xi1>
    %154 = vector.broadcast %153 : vector<1x256xi1> to vector<4x256xi1>
    %155 = vector.broadcast %cst_72 : f32 to vector<4x256xf32>
    %156 = arith.select %154, %147, %155 : vector<4x256xi1>, vector<4x256xf32>
    %c10 = arith.constant 10 : index
    %c0_73 = arith.constant 0 : index
    %c0_74 = arith.constant 0 : index
    %157 = vector.load %arg4[%c10, %c0_73, %c0_74] : memref<17x4x4xf32, #tpu.memory_space<vmem>>, vector<1x4x4xf32>
    %158 = vector.shape_cast %157 : vector<1x4x4xf32> to vector<4x4xf32>
    %cst_75 = arith.constant dense<0.000000e+00> : vector<4x256xf32>
    %159 = tpu.matmul %158, %156, %cst_75 {dimension_numbers = #tpu.dot_dimension_numbers<[1], [0], [0], [1], [0, 0, 1, 1], [], []>} : vector<4x4xf32>, vector<4x256xf32>, vector<4x256xf32> -> vector<4x256xf32>
    %160 = arith.addf %146, %159 : vector<4x256xf32>
    %c255_i32_76 = arith.constant 255 : i32
    %161 = tpu.dynamic_rotate %2 by %c255_i32_76 dim 1 : vector<4x256xf32>, i32 -> vector<4x256xf32>
    %c-1_i32_77 = arith.constant -1 : i32
    %162 = vector.broadcast %c-1_i32_77 : i32 to vector<1x256xi32>
    %163 = arith.cmpi sge, %0, %162 : vector<1x256xi32>
    %c127_i32_78 = arith.constant 127 : i32
    %164 = vector.broadcast %c127_i32_78 : i32 to vector<1x256xi32>
    %165 = arith.cmpi slt, %0, %164 : vector<1x256xi32>
    %166 = arith.andi %163, %165 : vector<1x256xi1>
    %cst_79 = arith.constant 0.000000e+00 : f32
    %167 = vector.shape_cast %166 : vector<1x256xi1> to vector<1x256xi1>
    %168 = vector.broadcast %167 : vector<1x256xi1> to vector<4x256xi1>
    %169 = vector.broadcast %cst_79 : f32 to vector<4x256xf32>
    %170 = arith.select %168, %161, %169 : vector<4x256xi1>, vector<4x256xf32>
    %c11 = arith.constant 11 : index
    %c0_80 = arith.constant 0 : index
    %c0_81 = arith.constant 0 : index
    %171 = vector.load %arg4[%c11, %c0_80, %c0_81] : memref<17x4x4xf32, #tpu.memory_space<vmem>>, vector<1x4x4xf32>
    %172 = vector.shape_cast %171 : vector<1x4x4xf32> to vector<4x4xf32>
    %cst_82 = arith.constant dense<0.000000e+00> : vector<4x256xf32>
    %173 = tpu.matmul %172, %170, %cst_82 {dimension_numbers = #tpu.dot_dimension_numbers<[1], [0], [0], [1], [0, 0, 1, 1], [], []>} : vector<4x4xf32>, vector<4x256xf32>, vector<4x256xf32> -> vector<4x256xf32>
    %174 = arith.addf %160, %173 : vector<4x256xf32>
    %c254_i32 = arith.constant 254 : i32
    %175 = tpu.dynamic_rotate %1 by %c254_i32 dim 1 : vector<4x256xf32>, i32 -> vector<4x256xf32>
    %c-2_i32 = arith.constant -2 : i32
    %176 = vector.broadcast %c-2_i32 : i32 to vector<1x256xi32>
    %177 = arith.cmpi sge, %0, %176 : vector<1x256xi32>
    %c126_i32 = arith.constant 126 : i32
    %178 = vector.broadcast %c126_i32 : i32 to vector<1x256xi32>
    %179 = arith.cmpi slt, %0, %178 : vector<1x256xi32>
    %180 = arith.andi %177, %179 : vector<1x256xi1>
    %cst_83 = arith.constant 0.000000e+00 : f32
    %181 = vector.shape_cast %180 : vector<1x256xi1> to vector<1x256xi1>
    %182 = vector.broadcast %181 : vector<1x256xi1> to vector<4x256xi1>
    %183 = vector.broadcast %cst_83 : f32 to vector<4x256xf32>
    %184 = arith.select %182, %175, %183 : vector<4x256xi1>, vector<4x256xf32>
    %c12 = arith.constant 12 : index
    %c0_84 = arith.constant 0 : index
    %c0_85 = arith.constant 0 : index
    %185 = vector.load %arg4[%c12, %c0_84, %c0_85] : memref<17x4x4xf32, #tpu.memory_space<vmem>>, vector<1x4x4xf32>
    %186 = vector.shape_cast %185 : vector<1x4x4xf32> to vector<4x4xf32>
    %cst_86 = arith.constant dense<0.000000e+00> : vector<4x256xf32>
    %187 = tpu.matmul %186, %184, %cst_86 {dimension_numbers = #tpu.dot_dimension_numbers<[1], [0], [0], [1], [0, 0, 1, 1], [], []>} : vector<4x4xf32>, vector<4x256xf32>, vector<4x256xf32> -> vector<4x256xf32>
    %188 = arith.addf %174, %187 : vector<4x256xf32>
    %c254_i32_87 = arith.constant 254 : i32
    %189 = tpu.dynamic_rotate %2 by %c254_i32_87 dim 1 : vector<4x256xf32>, i32 -> vector<4x256xf32>
    %c-2_i32_88 = arith.constant -2 : i32
    %190 = vector.broadcast %c-2_i32_88 : i32 to vector<1x256xi32>
    %191 = arith.cmpi sge, %0, %190 : vector<1x256xi32>
    %c126_i32_89 = arith.constant 126 : i32
    %192 = vector.broadcast %c126_i32_89 : i32 to vector<1x256xi32>
    %193 = arith.cmpi slt, %0, %192 : vector<1x256xi32>
    %194 = arith.andi %191, %193 : vector<1x256xi1>
    %cst_90 = arith.constant 0.000000e+00 : f32
    %195 = vector.shape_cast %194 : vector<1x256xi1> to vector<1x256xi1>
    %196 = vector.broadcast %195 : vector<1x256xi1> to vector<4x256xi1>
    %197 = vector.broadcast %cst_90 : f32 to vector<4x256xf32>
    %198 = arith.select %196, %189, %197 : vector<4x256xi1>, vector<4x256xf32>
    %c13 = arith.constant 13 : index
    %c0_91 = arith.constant 0 : index
    %c0_92 = arith.constant 0 : index
    %199 = vector.load %arg4[%c13, %c0_91, %c0_92] : memref<17x4x4xf32, #tpu.memory_space<vmem>>, vector<1x4x4xf32>
    %200 = vector.shape_cast %199 : vector<1x4x4xf32> to vector<4x4xf32>
    %cst_93 = arith.constant dense<0.000000e+00> : vector<4x256xf32>
    %201 = tpu.matmul %200, %198, %cst_93 {dimension_numbers = #tpu.dot_dimension_numbers<[1], [0], [0], [1], [0, 0, 1, 1], [], []>} : vector<4x4xf32>, vector<4x256xf32>, vector<4x256xf32> -> vector<4x256xf32>
    %202 = arith.addf %188, %201 : vector<4x256xf32>
    %c253_i32 = arith.constant 253 : i32
    %203 = tpu.dynamic_rotate %1 by %c253_i32 dim 1 : vector<4x256xf32>, i32 -> vector<4x256xf32>
    %c-3_i32 = arith.constant -3 : i32
    %204 = vector.broadcast %c-3_i32 : i32 to vector<1x256xi32>
    %205 = arith.cmpi sge, %0, %204 : vector<1x256xi32>
    %c125_i32 = arith.constant 125 : i32
    %206 = vector.broadcast %c125_i32 : i32 to vector<1x256xi32>
    %207 = arith.cmpi slt, %0, %206 : vector<1x256xi32>
    %208 = arith.andi %205, %207 : vector<1x256xi1>
    %cst_94 = arith.constant 0.000000e+00 : f32
    %209 = vector.shape_cast %208 : vector<1x256xi1> to vector<1x256xi1>
    %210 = vector.broadcast %209 : vector<1x256xi1> to vector<4x256xi1>
    %211 = vector.broadcast %cst_94 : f32 to vector<4x256xf32>
    %212 = arith.select %210, %203, %211 : vector<4x256xi1>, vector<4x256xf32>
    %c14 = arith.constant 14 : index
    %c0_95 = arith.constant 0 : index
    %c0_96 = arith.constant 0 : index
    %213 = vector.load %arg4[%c14, %c0_95, %c0_96] : memref<17x4x4xf32, #tpu.memory_space<vmem>>, vector<1x4x4xf32>
    %214 = vector.shape_cast %213 : vector<1x4x4xf32> to vector<4x4xf32>
    %cst_97 = arith.constant dense<0.000000e+00> : vector<4x256xf32>
    %215 = tpu.matmul %214, %212, %cst_97 {dimension_numbers = #tpu.dot_dimension_numbers<[1], [0], [0], [1], [0, 0, 1, 1], [], []>} : vector<4x4xf32>, vector<4x256xf32>, vector<4x256xf32> -> vector<4x256xf32>
    %216 = arith.addf %202, %215 : vector<4x256xf32>
    %c253_i32_98 = arith.constant 253 : i32
    %217 = tpu.dynamic_rotate %2 by %c253_i32_98 dim 1 : vector<4x256xf32>, i32 -> vector<4x256xf32>
    %c-3_i32_99 = arith.constant -3 : i32
    %218 = vector.broadcast %c-3_i32_99 : i32 to vector<1x256xi32>
    %219 = arith.cmpi sge, %0, %218 : vector<1x256xi32>
    %c125_i32_100 = arith.constant 125 : i32
    %220 = vector.broadcast %c125_i32_100 : i32 to vector<1x256xi32>
    %221 = arith.cmpi slt, %0, %220 : vector<1x256xi32>
    %222 = arith.andi %219, %221 : vector<1x256xi1>
    %cst_101 = arith.constant 0.000000e+00 : f32
    %223 = vector.shape_cast %222 : vector<1x256xi1> to vector<1x256xi1>
    %224 = vector.broadcast %223 : vector<1x256xi1> to vector<4x256xi1>
    %225 = vector.broadcast %cst_101 : f32 to vector<4x256xf32>
    %226 = arith.select %224, %217, %225 : vector<4x256xi1>, vector<4x256xf32>
    %c15 = arith.constant 15 : index
    %c0_102 = arith.constant 0 : index
    %c0_103 = arith.constant 0 : index
    %227 = vector.load %arg4[%c15, %c0_102, %c0_103] : memref<17x4x4xf32, #tpu.memory_space<vmem>>, vector<1x4x4xf32>
    %228 = vector.shape_cast %227 : vector<1x4x4xf32> to vector<4x4xf32>
    %cst_104 = arith.constant dense<0.000000e+00> : vector<4x256xf32>
    %229 = tpu.matmul %228, %226, %cst_104 {dimension_numbers = #tpu.dot_dimension_numbers<[1], [0], [0], [1], [0, 0, 1, 1], [], []>} : vector<4x4xf32>, vector<4x256xf32>, vector<4x256xf32> -> vector<4x256xf32>
    %230 = arith.addf %216, %229 : vector<4x256xf32>
    %c252_i32 = arith.constant 252 : i32
    %231 = tpu.dynamic_rotate %1 by %c252_i32 dim 1 : vector<4x256xf32>, i32 -> vector<4x256xf32>
    %c-4_i32 = arith.constant -4 : i32
    %232 = vector.broadcast %c-4_i32 : i32 to vector<1x256xi32>
    %233 = arith.cmpi sge, %0, %232 : vector<1x256xi32>
    %c124_i32 = arith.constant 124 : i32
    %234 = vector.broadcast %c124_i32 : i32 to vector<1x256xi32>
    %235 = arith.cmpi slt, %0, %234 : vector<1x256xi32>
    %236 = arith.andi %233, %235 : vector<1x256xi1>
    %cst_105 = arith.constant 0.000000e+00 : f32
    %237 = vector.shape_cast %236 : vector<1x256xi1> to vector<1x256xi1>
    %238 = vector.broadcast %237 : vector<1x256xi1> to vector<4x256xi1>
    %239 = vector.broadcast %cst_105 : f32 to vector<4x256xf32>
    %240 = arith.select %238, %231, %239 : vector<4x256xi1>, vector<4x256xf32>
    %c16 = arith.constant 16 : index
    %c0_106 = arith.constant 0 : index
    %c0_107 = arith.constant 0 : index
    %241 = vector.load %arg4[%c16, %c0_106, %c0_107] : memref<17x4x4xf32, #tpu.memory_space<vmem>>, vector<1x4x4xf32>
    %242 = vector.shape_cast %241 : vector<1x4x4xf32> to vector<4x4xf32>
    %cst_108 = arith.constant dense<0.000000e+00> : vector<4x256xf32>
    %243 = tpu.matmul %242, %240, %cst_108 {dimension_numbers = #tpu.dot_dimension_numbers<[1], [0], [0], [1], [0, 0, 1, 1], [], []>} : vector<4x4xf32>, vector<4x256xf32>, vector<4x256xf32> -> vector<4x256xf32>
    %244 = arith.addf %230, %243 : vector<4x256xf32>
    %cst_109 = arith.constant dense<0.000000e+00> : vector<4xf32>
    %245 = vector.multi_reduction <add>, %244, %cst_109 [1] : vector<4x256xf32> to vector<4xf32>
    %246 = vector.shape_cast %245 : vector<4xf32> to vector<4x1xf32>
    %cst_110 = arith.constant 3.906250e-03 : f32
    %247 = vector.broadcast %cst_110 : f32 to vector<4x1xf32>
    %248 = arith.mulf %246, %247 : vector<4x1xf32>
    %249 = vector.broadcast %248 : vector<4x1xf32> to vector<4x256xf32>
    %250 = arith.subf %244, %249 : vector<4x256xf32>
    %251 = arith.mulf %250, %250 : vector<4x256xf32>
    %cst_111 = arith.constant dense<0.000000e+00> : vector<4xf32>
    %252 = vector.multi_reduction <add>, %251, %cst_111 [1] : vector<4x256xf32> to vector<4xf32>
    %253 = vector.shape_cast %252 : vector<4xf32> to vector<4x1xf32>
    %cst_112 = arith.constant 3.906250e-03 : f32
    %254 = vector.broadcast %cst_112 : f32 to vector<4x1xf32>
    %255 = arith.mulf %253, %254 : vector<4x1xf32>
    %c0_113 = arith.constant 0 : index
    %c0_114 = arith.constant 0 : index
    %256 = vector.load %arg8[%c0_113, %c0_114] : memref<4x1xf32, #tpu.memory_space<vmem>>, vector<4x1xf32>
    %cst_115 = arith.constant 9.99999974E-6 : f32
    %257 = vector.broadcast %cst_115 : f32 to vector<4x1xf32>
    %258 = arith.addf %255, %257 : vector<4x1xf32>
    %259 = math.rsqrt %258 : vector<4x1xf32>
    %260 = arith.mulf %256, %259 : vector<4x1xf32>
    %261 = vector.broadcast %260 : vector<4x1xf32> to vector<4x256xf32>
    %262 = arith.mulf %250, %261 : vector<4x256xf32>
    %c0_116 = arith.constant 0 : index
    %c0_117 = arith.constant 0 : index
    %263 = vector.load %arg9[%c0_116, %c0_117] : memref<4x1xf32, #tpu.memory_space<vmem>>, vector<4x1xf32>
    %264 = vector.broadcast %263 : vector<4x1xf32> to vector<4x256xf32>
    %265 = arith.addf %262, %264 : vector<4x256xf32>
    %cst_118 = arith.constant 0.000000e+00 : f32
    %266 = vector.broadcast %cst_118 : f32 to vector<4x256xf32>
    %267 = arith.maximumf %265, %266 : vector<4x256xf32>
    %cst_119 = arith.constant 0.000000e+00 : f32
    %268 = vector.broadcast %cst_119 : f32 to vector<8x256xf32>
    %c0_120 = arith.constant 0 : index
    %c0_121 = arith.constant 0 : index
    %c0_122 = arith.constant 0 : index
    %269 = vector.load %arg5[%c0_120, %c0_121, %c0_122] : memref<17x8x4xf32, #tpu.memory_space<vmem>>, vector<1x8x4xf32>
    %270 = vector.shape_cast %269 : vector<1x8x4xf32> to vector<8x4xf32>
    %c8_i32 = arith.constant 8 : i32
    %271 = tpu.dynamic_rotate %267 by %c8_i32 dim 1 : vector<4x256xf32>, i32 -> vector<4x256xf32>
    %c8_i32_123 = arith.constant 8 : i32
    %272 = vector.broadcast %c8_i32_123 : i32 to vector<1x256xi32>
    %273 = arith.cmpi sge, %0, %272 : vector<1x256xi32>
    %c136_i32 = arith.constant 136 : i32
    %274 = vector.broadcast %c136_i32 : i32 to vector<1x256xi32>
    %275 = arith.cmpi slt, %0, %274 : vector<1x256xi32>
    %276 = arith.andi %273, %275 : vector<1x256xi1>
    %cst_124 = arith.constant 0.000000e+00 : f32
    %277 = vector.shape_cast %276 : vector<1x256xi1> to vector<1x256xi1>
    %278 = vector.broadcast %277 : vector<1x256xi1> to vector<4x256xi1>
    %279 = vector.broadcast %cst_124 : f32 to vector<4x256xf32>
    %280 = arith.select %278, %271, %279 : vector<4x256xi1>, vector<4x256xf32>
    %cst_125 = arith.constant dense<0.000000e+00> : vector<8x256xf32>
    %281 = tpu.matmul %270, %280, %cst_125 {dimension_numbers = #tpu.dot_dimension_numbers<[1], [0], [0], [1], [0, 0, 1, 1], [], []>} : vector<8x4xf32>, vector<4x256xf32>, vector<8x256xf32> -> vector<8x256xf32>
    %282 = arith.addf %268, %281 : vector<8x256xf32>
    %c1_126 = arith.constant 1 : index
    %c0_127 = arith.constant 0 : index
    %c0_128 = arith.constant 0 : index
    %283 = vector.load %arg5[%c1_126, %c0_127, %c0_128] : memref<17x8x4xf32, #tpu.memory_space<vmem>>, vector<1x8x4xf32>
    %284 = vector.shape_cast %283 : vector<1x8x4xf32> to vector<8x4xf32>
    %c7_i32 = arith.constant 7 : i32
    %285 = tpu.dynamic_rotate %267 by %c7_i32 dim 1 : vector<4x256xf32>, i32 -> vector<4x256xf32>
    %c7_i32_129 = arith.constant 7 : i32
    %286 = vector.broadcast %c7_i32_129 : i32 to vector<1x256xi32>
    %287 = arith.cmpi sge, %0, %286 : vector<1x256xi32>
    %c135_i32 = arith.constant 135 : i32
    %288 = vector.broadcast %c135_i32 : i32 to vector<1x256xi32>
    %289 = arith.cmpi slt, %0, %288 : vector<1x256xi32>
    %290 = arith.andi %287, %289 : vector<1x256xi1>
    %cst_130 = arith.constant 0.000000e+00 : f32
    %291 = vector.shape_cast %290 : vector<1x256xi1> to vector<1x256xi1>
    %292 = vector.broadcast %291 : vector<1x256xi1> to vector<4x256xi1>
    %293 = vector.broadcast %cst_130 : f32 to vector<4x256xf32>
    %294 = arith.select %292, %285, %293 : vector<4x256xi1>, vector<4x256xf32>
    %cst_131 = arith.constant dense<0.000000e+00> : vector<8x256xf32>
    %295 = tpu.matmul %284, %294, %cst_131 {dimension_numbers = #tpu.dot_dimension_numbers<[1], [0], [0], [1], [0, 0, 1, 1], [], []>} : vector<8x4xf32>, vector<4x256xf32>, vector<8x256xf32> -> vector<8x256xf32>
    %296 = arith.addf %282, %295 : vector<8x256xf32>
    %c2_132 = arith.constant 2 : index
    %c0_133 = arith.constant 0 : index
    %c0_134 = arith.constant 0 : index
    %297 = vector.load %arg5[%c2_132, %c0_133, %c0_134] : memref<17x8x4xf32, #tpu.memory_space<vmem>>, vector<1x8x4xf32>
    %298 = vector.shape_cast %297 : vector<1x8x4xf32> to vector<8x4xf32>
    %c6_i32 = arith.constant 6 : i32
    %299 = tpu.dynamic_rotate %267 by %c6_i32 dim 1 : vector<4x256xf32>, i32 -> vector<4x256xf32>
    %c6_i32_135 = arith.constant 6 : i32
    %300 = vector.broadcast %c6_i32_135 : i32 to vector<1x256xi32>
    %301 = arith.cmpi sge, %0, %300 : vector<1x256xi32>
    %c134_i32 = arith.constant 134 : i32
    %302 = vector.broadcast %c134_i32 : i32 to vector<1x256xi32>
    %303 = arith.cmpi slt, %0, %302 : vector<1x256xi32>
    %304 = arith.andi %301, %303 : vector<1x256xi1>
    %cst_136 = arith.constant 0.000000e+00 : f32
    %305 = vector.shape_cast %304 : vector<1x256xi1> to vector<1x256xi1>
    %306 = vector.broadcast %305 : vector<1x256xi1> to vector<4x256xi1>
    %307 = vector.broadcast %cst_136 : f32 to vector<4x256xf32>
    %308 = arith.select %306, %299, %307 : vector<4x256xi1>, vector<4x256xf32>
    %cst_137 = arith.constant dense<0.000000e+00> : vector<8x256xf32>
    %309 = tpu.matmul %298, %308, %cst_137 {dimension_numbers = #tpu.dot_dimension_numbers<[1], [0], [0], [1], [0, 0, 1, 1], [], []>} : vector<8x4xf32>, vector<4x256xf32>, vector<8x256xf32> -> vector<8x256xf32>
    %310 = arith.addf %296, %309 : vector<8x256xf32>
    %c3_138 = arith.constant 3 : index
    %c0_139 = arith.constant 0 : index
    %c0_140 = arith.constant 0 : index
    %311 = vector.load %arg5[%c3_138, %c0_139, %c0_140] : memref<17x8x4xf32, #tpu.memory_space<vmem>>, vector<1x8x4xf32>
    %312 = vector.shape_cast %311 : vector<1x8x4xf32> to vector<8x4xf32>
    %c5_i32 = arith.constant 5 : i32
    %313 = tpu.dynamic_rotate %267 by %c5_i32 dim 1 : vector<4x256xf32>, i32 -> vector<4x256xf32>
    %c5_i32_141 = arith.constant 5 : i32
    %314 = vector.broadcast %c5_i32_141 : i32 to vector<1x256xi32>
    %315 = arith.cmpi sge, %0, %314 : vector<1x256xi32>
    %c133_i32 = arith.constant 133 : i32
    %316 = vector.broadcast %c133_i32 : i32 to vector<1x256xi32>
    %317 = arith.cmpi slt, %0, %316 : vector<1x256xi32>
    %318 = arith.andi %315, %317 : vector<1x256xi1>
    %cst_142 = arith.constant 0.000000e+00 : f32
    %319 = vector.shape_cast %318 : vector<1x256xi1> to vector<1x256xi1>
    %320 = vector.broadcast %319 : vector<1x256xi1> to vector<4x256xi1>
    %321 = vector.broadcast %cst_142 : f32 to vector<4x256xf32>
    %322 = arith.select %320, %313, %321 : vector<4x256xi1>, vector<4x256xf32>
    %cst_143 = arith.constant dense<0.000000e+00> : vector<8x256xf32>
    %323 = tpu.matmul %312, %322, %cst_143 {dimension_numbers = #tpu.dot_dimension_numbers<[1], [0], [0], [1], [0, 0, 1, 1], [], []>} : vector<8x4xf32>, vector<4x256xf32>, vector<8x256xf32> -> vector<8x256xf32>
    %324 = arith.addf %310, %323 : vector<8x256xf32>
    %c4_144 = arith.constant 4 : index
    %c0_145 = arith.constant 0 : index
    %c0_146 = arith.constant 0 : index
    %325 = vector.load %arg5[%c4_144, %c0_145, %c0_146] : memref<17x8x4xf32, #tpu.memory_space<vmem>>, vector<1x8x4xf32>
    %326 = vector.shape_cast %325 : vector<1x8x4xf32> to vector<8x4xf32>
    %c4_i32_147 = arith.constant 4 : i32
    %327 = tpu.dynamic_rotate %267 by %c4_i32_147 dim 1 : vector<4x256xf32>, i32 -> vector<4x256xf32>
    %c4_i32_148 = arith.constant 4 : i32
    %328 = vector.broadcast %c4_i32_148 : i32 to vector<1x256xi32>
    %329 = arith.cmpi sge, %0, %328 : vector<1x256xi32>
    %c132_i32_149 = arith.constant 132 : i32
    %330 = vector.broadcast %c132_i32_149 : i32 to vector<1x256xi32>
    %331 = arith.cmpi slt, %0, %330 : vector<1x256xi32>
    %332 = arith.andi %329, %331 : vector<1x256xi1>
    %cst_150 = arith.constant 0.000000e+00 : f32
    %333 = vector.shape_cast %332 : vector<1x256xi1> to vector<1x256xi1>
    %334 = vector.broadcast %333 : vector<1x256xi1> to vector<4x256xi1>
    %335 = vector.broadcast %cst_150 : f32 to vector<4x256xf32>
    %336 = arith.select %334, %327, %335 : vector<4x256xi1>, vector<4x256xf32>
    %cst_151 = arith.constant dense<0.000000e+00> : vector<8x256xf32>
    %337 = tpu.matmul %326, %336, %cst_151 {dimension_numbers = #tpu.dot_dimension_numbers<[1], [0], [0], [1], [0, 0, 1, 1], [], []>} : vector<8x4xf32>, vector<4x256xf32>, vector<8x256xf32> -> vector<8x256xf32>
    %338 = arith.addf %324, %337 : vector<8x256xf32>
    %c5_152 = arith.constant 5 : index
    %c0_153 = arith.constant 0 : index
    %c0_154 = arith.constant 0 : index
    %339 = vector.load %arg5[%c5_152, %c0_153, %c0_154] : memref<17x8x4xf32, #tpu.memory_space<vmem>>, vector<1x8x4xf32>
    %340 = vector.shape_cast %339 : vector<1x8x4xf32> to vector<8x4xf32>
    %c3_i32_155 = arith.constant 3 : i32
    %341 = tpu.dynamic_rotate %267 by %c3_i32_155 dim 1 : vector<4x256xf32>, i32 -> vector<4x256xf32>
    %c3_i32_156 = arith.constant 3 : i32
    %342 = vector.broadcast %c3_i32_156 : i32 to vector<1x256xi32>
    %343 = arith.cmpi sge, %0, %342 : vector<1x256xi32>
    %c131_i32_157 = arith.constant 131 : i32
    %344 = vector.broadcast %c131_i32_157 : i32 to vector<1x256xi32>
    %345 = arith.cmpi slt, %0, %344 : vector<1x256xi32>
    %346 = arith.andi %343, %345 : vector<1x256xi1>
    %cst_158 = arith.constant 0.000000e+00 : f32
    %347 = vector.shape_cast %346 : vector<1x256xi1> to vector<1x256xi1>
    %348 = vector.broadcast %347 : vector<1x256xi1> to vector<4x256xi1>
    %349 = vector.broadcast %cst_158 : f32 to vector<4x256xf32>
    %350 = arith.select %348, %341, %349 : vector<4x256xi1>, vector<4x256xf32>
    %cst_159 = arith.constant dense<0.000000e+00> : vector<8x256xf32>
    %351 = tpu.matmul %340, %350, %cst_159 {dimension_numbers = #tpu.dot_dimension_numbers<[1], [0], [0], [1], [0, 0, 1, 1], [], []>} : vector<8x4xf32>, vector<4x256xf32>, vector<8x256xf32> -> vector<8x256xf32>
    %352 = arith.addf %338, %351 : vector<8x256xf32>
    %c6_160 = arith.constant 6 : index
    %c0_161 = arith.constant 0 : index
    %c0_162 = arith.constant 0 : index
    %353 = vector.load %arg5[%c6_160, %c0_161, %c0_162] : memref<17x8x4xf32, #tpu.memory_space<vmem>>, vector<1x8x4xf32>
    %354 = vector.shape_cast %353 : vector<1x8x4xf32> to vector<8x4xf32>
    %c2_i32_163 = arith.constant 2 : i32
    %355 = tpu.dynamic_rotate %267 by %c2_i32_163 dim 1 : vector<4x256xf32>, i32 -> vector<4x256xf32>
    %c2_i32_164 = arith.constant 2 : i32
    %356 = vector.broadcast %c2_i32_164 : i32 to vector<1x256xi32>
    %357 = arith.cmpi sge, %0, %356 : vector<1x256xi32>
    %c130_i32_165 = arith.constant 130 : i32
    %358 = vector.broadcast %c130_i32_165 : i32 to vector<1x256xi32>
    %359 = arith.cmpi slt, %0, %358 : vector<1x256xi32>
    %360 = arith.andi %357, %359 : vector<1x256xi1>
    %cst_166 = arith.constant 0.000000e+00 : f32
    %361 = vector.shape_cast %360 : vector<1x256xi1> to vector<1x256xi1>
    %362 = vector.broadcast %361 : vector<1x256xi1> to vector<4x256xi1>
    %363 = vector.broadcast %cst_166 : f32 to vector<4x256xf32>
    %364 = arith.select %362, %355, %363 : vector<4x256xi1>, vector<4x256xf32>
    %cst_167 = arith.constant dense<0.000000e+00> : vector<8x256xf32>
    %365 = tpu.matmul %354, %364, %cst_167 {dimension_numbers = #tpu.dot_dimension_numbers<[1], [0], [0], [1], [0, 0, 1, 1], [], []>} : vector<8x4xf32>, vector<4x256xf32>, vector<8x256xf32> -> vector<8x256xf32>
    %366 = arith.addf %352, %365 : vector<8x256xf32>
    %c7_168 = arith.constant 7 : index
    %c0_169 = arith.constant 0 : index
    %c0_170 = arith.constant 0 : index
    %367 = vector.load %arg5[%c7_168, %c0_169, %c0_170] : memref<17x8x4xf32, #tpu.memory_space<vmem>>, vector<1x8x4xf32>
    %368 = vector.shape_cast %367 : vector<1x8x4xf32> to vector<8x4xf32>
    %c1_i32_171 = arith.constant 1 : i32
    %369 = tpu.dynamic_rotate %267 by %c1_i32_171 dim 1 : vector<4x256xf32>, i32 -> vector<4x256xf32>
    %c1_i32_172 = arith.constant 1 : i32
    %370 = vector.broadcast %c1_i32_172 : i32 to vector<1x256xi32>
    %371 = arith.cmpi sge, %0, %370 : vector<1x256xi32>
    %c129_i32_173 = arith.constant 129 : i32
    %372 = vector.broadcast %c129_i32_173 : i32 to vector<1x256xi32>
    %373 = arith.cmpi slt, %0, %372 : vector<1x256xi32>
    %374 = arith.andi %371, %373 : vector<1x256xi1>
    %cst_174 = arith.constant 0.000000e+00 : f32
    %375 = vector.shape_cast %374 : vector<1x256xi1> to vector<1x256xi1>
    %376 = vector.broadcast %375 : vector<1x256xi1> to vector<4x256xi1>
    %377 = vector.broadcast %cst_174 : f32 to vector<4x256xf32>
    %378 = arith.select %376, %369, %377 : vector<4x256xi1>, vector<4x256xf32>
    %cst_175 = arith.constant dense<0.000000e+00> : vector<8x256xf32>
    %379 = tpu.matmul %368, %378, %cst_175 {dimension_numbers = #tpu.dot_dimension_numbers<[1], [0], [0], [1], [0, 0, 1, 1], [], []>} : vector<8x4xf32>, vector<4x256xf32>, vector<8x256xf32> -> vector<8x256xf32>
    %380 = arith.addf %366, %379 : vector<8x256xf32>
    %c8_176 = arith.constant 8 : index
    %c0_177 = arith.constant 0 : index
    %c0_178 = arith.constant 0 : index
    %381 = vector.load %arg5[%c8_176, %c0_177, %c0_178] : memref<17x8x4xf32, #tpu.memory_space<vmem>>, vector<1x8x4xf32>
    %382 = vector.shape_cast %381 : vector<1x8x4xf32> to vector<8x4xf32>
    %cst_179 = arith.constant dense<0.000000e+00> : vector<8x256xf32>
    %383 = tpu.matmul %382, %267, %cst_179 {dimension_numbers = #tpu.dot_dimension_numbers<[1], [0], [0], [1], [0, 0, 1, 1], [], []>} : vector<8x4xf32>, vector<4x256xf32>, vector<8x256xf32> -> vector<8x256xf32>
    %384 = arith.addf %380, %383 : vector<8x256xf32>
    %c9_180 = arith.constant 9 : index
    %c0_181 = arith.constant 0 : index
    %c0_182 = arith.constant 0 : index
    %385 = vector.load %arg5[%c9_180, %c0_181, %c0_182] : memref<17x8x4xf32, #tpu.memory_space<vmem>>, vector<1x8x4xf32>
    %386 = vector.shape_cast %385 : vector<1x8x4xf32> to vector<8x4xf32>
    %c255_i32_183 = arith.constant 255 : i32
    %387 = tpu.dynamic_rotate %267 by %c255_i32_183 dim 1 : vector<4x256xf32>, i32 -> vector<4x256xf32>
    %c-1_i32_184 = arith.constant -1 : i32
    %388 = vector.broadcast %c-1_i32_184 : i32 to vector<1x256xi32>
    %389 = arith.cmpi sge, %0, %388 : vector<1x256xi32>
    %c127_i32_185 = arith.constant 127 : i32
    %390 = vector.broadcast %c127_i32_185 : i32 to vector<1x256xi32>
    %391 = arith.cmpi slt, %0, %390 : vector<1x256xi32>
    %392 = arith.andi %389, %391 : vector<1x256xi1>
    %cst_186 = arith.constant 0.000000e+00 : f32
    %393 = vector.shape_cast %392 : vector<1x256xi1> to vector<1x256xi1>
    %394 = vector.broadcast %393 : vector<1x256xi1> to vector<4x256xi1>
    %395 = vector.broadcast %cst_186 : f32 to vector<4x256xf32>
    %396 = arith.select %394, %387, %395 : vector<4x256xi1>, vector<4x256xf32>
    %cst_187 = arith.constant dense<0.000000e+00> : vector<8x256xf32>
    %397 = tpu.matmul %386, %396, %cst_187 {dimension_numbers = #tpu.dot_dimension_numbers<[1], [0], [0], [1], [0, 0, 1, 1], [], []>} : vector<8x4xf32>, vector<4x256xf32>, vector<8x256xf32> -> vector<8x256xf32>
    %398 = arith.addf %384, %397 : vector<8x256xf32>
    %c10_188 = arith.constant 10 : index
    %c0_189 = arith.constant 0 : index
    %c0_190 = arith.constant 0 : index
    %399 = vector.load %arg5[%c10_188, %c0_189, %c0_190] : memref<17x8x4xf32, #tpu.memory_space<vmem>>, vector<1x8x4xf32>
    %400 = vector.shape_cast %399 : vector<1x8x4xf32> to vector<8x4xf32>
    %c254_i32_191 = arith.constant 254 : i32
    %401 = tpu.dynamic_rotate %267 by %c254_i32_191 dim 1 : vector<4x256xf32>, i32 -> vector<4x256xf32>
    %c-2_i32_192 = arith.constant -2 : i32
    %402 = vector.broadcast %c-2_i32_192 : i32 to vector<1x256xi32>
    %403 = arith.cmpi sge, %0, %402 : vector<1x256xi32>
    %c126_i32_193 = arith.constant 126 : i32
    %404 = vector.broadcast %c126_i32_193 : i32 to vector<1x256xi32>
    %405 = arith.cmpi slt, %0, %404 : vector<1x256xi32>
    %406 = arith.andi %403, %405 : vector<1x256xi1>
    %cst_194 = arith.constant 0.000000e+00 : f32
    %407 = vector.shape_cast %406 : vector<1x256xi1> to vector<1x256xi1>
    %408 = vector.broadcast %407 : vector<1x256xi1> to vector<4x256xi1>
    %409 = vector.broadcast %cst_194 : f32 to vector<4x256xf32>
    %410 = arith.select %408, %401, %409 : vector<4x256xi1>, vector<4x256xf32>
    %cst_195 = arith.constant dense<0.000000e+00> : vector<8x256xf32>
    %411 = tpu.matmul %400, %410, %cst_195 {dimension_numbers = #tpu.dot_dimension_numbers<[1], [0], [0], [1], [0, 0, 1, 1], [], []>} : vector<8x4xf32>, vector<4x256xf32>, vector<8x256xf32> -> vector<8x256xf32>
    %412 = arith.addf %398, %411 : vector<8x256xf32>
    %c11_196 = arith.constant 11 : index
    %c0_197 = arith.constant 0 : index
    %c0_198 = arith.constant 0 : index
    %413 = vector.load %arg5[%c11_196, %c0_197, %c0_198] : memref<17x8x4xf32, #tpu.memory_space<vmem>>, vector<1x8x4xf32>
    %414 = vector.shape_cast %413 : vector<1x8x4xf32> to vector<8x4xf32>
    %c253_i32_199 = arith.constant 253 : i32
    %415 = tpu.dynamic_rotate %267 by %c253_i32_199 dim 1 : vector<4x256xf32>, i32 -> vector<4x256xf32>
    %c-3_i32_200 = arith.constant -3 : i32
    %416 = vector.broadcast %c-3_i32_200 : i32 to vector<1x256xi32>
    %417 = arith.cmpi sge, %0, %416 : vector<1x256xi32>
    %c125_i32_201 = arith.constant 125 : i32
    %418 = vector.broadcast %c125_i32_201 : i32 to vector<1x256xi32>
    %419 = arith.cmpi slt, %0, %418 : vector<1x256xi32>
    %420 = arith.andi %417, %419 : vector<1x256xi1>
    %cst_202 = arith.constant 0.000000e+00 : f32
    %421 = vector.shape_cast %420 : vector<1x256xi1> to vector<1x256xi1>
    %422 = vector.broadcast %421 : vector<1x256xi1> to vector<4x256xi1>
    %423 = vector.broadcast %cst_202 : f32 to vector<4x256xf32>
    %424 = arith.select %422, %415, %423 : vector<4x256xi1>, vector<4x256xf32>
    %cst_203 = arith.constant dense<0.000000e+00> : vector<8x256xf32>
    %425 = tpu.matmul %414, %424, %cst_203 {dimension_numbers = #tpu.dot_dimension_numbers<[1], [0], [0], [1], [0, 0, 1, 1], [], []>} : vector<8x4xf32>, vector<4x256xf32>, vector<8x256xf32> -> vector<8x256xf32>
    %426 = arith.addf %412, %425 : vector<8x256xf32>
    %c12_204 = arith.constant 12 : index
    %c0_205 = arith.constant 0 : index
    %c0_206 = arith.constant 0 : index
    %427 = vector.load %arg5[%c12_204, %c0_205, %c0_206] : memref<17x8x4xf32, #tpu.memory_space<vmem>>, vector<1x8x4xf32>
    %428 = vector.shape_cast %427 : vector<1x8x4xf32> to vector<8x4xf32>
    %c252_i32_207 = arith.constant 252 : i32
    %429 = tpu.dynamic_rotate %267 by %c252_i32_207 dim 1 : vector<4x256xf32>, i32 -> vector<4x256xf32>
    %c-4_i32_208 = arith.constant -4 : i32
    %430 = vector.broadcast %c-4_i32_208 : i32 to vector<1x256xi32>
    %431 = arith.cmpi sge, %0, %430 : vector<1x256xi32>
    %c124_i32_209 = arith.constant 124 : i32
    %432 = vector.broadcast %c124_i32_209 : i32 to vector<1x256xi32>
    %433 = arith.cmpi slt, %0, %432 : vector<1x256xi32>
    %434 = arith.andi %431, %433 : vector<1x256xi1>
    %cst_210 = arith.constant 0.000000e+00 : f32
    %435 = vector.shape_cast %434 : vector<1x256xi1> to vector<1x256xi1>
    %436 = vector.broadcast %435 : vector<1x256xi1> to vector<4x256xi1>
    %437 = vector.broadcast %cst_210 : f32 to vector<4x256xf32>
    %438 = arith.select %436, %429, %437 : vector<4x256xi1>, vector<4x256xf32>
    %cst_211 = arith.constant dense<0.000000e+00> : vector<8x256xf32>
    %439 = tpu.matmul %428, %438, %cst_211 {dimension_numbers = #tpu.dot_dimension_numbers<[1], [0], [0], [1], [0, 0, 1, 1], [], []>} : vector<8x4xf32>, vector<4x256xf32>, vector<8x256xf32> -> vector<8x256xf32>
    %440 = arith.addf %426, %439 : vector<8x256xf32>
    %c13_212 = arith.constant 13 : index
    %c0_213 = arith.constant 0 : index
    %c0_214 = arith.constant 0 : index
    %441 = vector.load %arg5[%c13_212, %c0_213, %c0_214] : memref<17x8x4xf32, #tpu.memory_space<vmem>>, vector<1x8x4xf32>
    %442 = vector.shape_cast %441 : vector<1x8x4xf32> to vector<8x4xf32>
    %c251_i32 = arith.constant 251 : i32
    %443 = tpu.dynamic_rotate %267 by %c251_i32 dim 1 : vector<4x256xf32>, i32 -> vector<4x256xf32>
    %c-5_i32 = arith.constant -5 : i32
    %444 = vector.broadcast %c-5_i32 : i32 to vector<1x256xi32>
    %445 = arith.cmpi sge, %0, %444 : vector<1x256xi32>
    %c123_i32 = arith.constant 123 : i32
    %446 = vector.broadcast %c123_i32 : i32 to vector<1x256xi32>
    %447 = arith.cmpi slt, %0, %446 : vector<1x256xi32>
    %448 = arith.andi %445, %447 : vector<1x256xi1>
    %cst_215 = arith.constant 0.000000e+00 : f32
    %449 = vector.shape_cast %448 : vector<1x256xi1> to vector<1x256xi1>
    %450 = vector.broadcast %449 : vector<1x256xi1> to vector<4x256xi1>
    %451 = vector.broadcast %cst_215 : f32 to vector<4x256xf32>
    %452 = arith.select %450, %443, %451 : vector<4x256xi1>, vector<4x256xf32>
    %cst_216 = arith.constant dense<0.000000e+00> : vector<8x256xf32>
    %453 = tpu.matmul %442, %452, %cst_216 {dimension_numbers = #tpu.dot_dimension_numbers<[1], [0], [0], [1], [0, 0, 1, 1], [], []>} : vector<8x4xf32>, vector<4x256xf32>, vector<8x256xf32> -> vector<8x256xf32>
    %454 = arith.addf %440, %453 : vector<8x256xf32>
    %c14_217 = arith.constant 14 : index
    %c0_218 = arith.constant 0 : index
    %c0_219 = arith.constant 0 : index
    %455 = vector.load %arg5[%c14_217, %c0_218, %c0_219] : memref<17x8x4xf32, #tpu.memory_space<vmem>>, vector<1x8x4xf32>
    %456 = vector.shape_cast %455 : vector<1x8x4xf32> to vector<8x4xf32>
    %c250_i32 = arith.constant 250 : i32
    %457 = tpu.dynamic_rotate %267 by %c250_i32 dim 1 : vector<4x256xf32>, i32 -> vector<4x256xf32>
    %c-6_i32 = arith.constant -6 : i32
    %458 = vector.broadcast %c-6_i32 : i32 to vector<1x256xi32>
    %459 = arith.cmpi sge, %0, %458 : vector<1x256xi32>
    %c122_i32 = arith.constant 122 : i32
    %460 = vector.broadcast %c122_i32 : i32 to vector<1x256xi32>
    %461 = arith.cmpi slt, %0, %460 : vector<1x256xi32>
    %462 = arith.andi %459, %461 : vector<1x256xi1>
    %cst_220 = arith.constant 0.000000e+00 : f32
    %463 = vector.shape_cast %462 : vector<1x256xi1> to vector<1x256xi1>
    %464 = vector.broadcast %463 : vector<1x256xi1> to vector<4x256xi1>
    %465 = vector.broadcast %cst_220 : f32 to vector<4x256xf32>
    %466 = arith.select %464, %457, %465 : vector<4x256xi1>, vector<4x256xf32>
    %cst_221 = arith.constant dense<0.000000e+00> : vector<8x256xf32>
    %467 = tpu.matmul %456, %466, %cst_221 {dimension_numbers = #tpu.dot_dimension_numbers<[1], [0], [0], [1], [0, 0, 1, 1], [], []>} : vector<8x4xf32>, vector<4x256xf32>, vector<8x256xf32> -> vector<8x256xf32>
    %468 = arith.addf %454, %467 : vector<8x256xf32>
    %c15_222 = arith.constant 15 : index
    %c0_223 = arith.constant 0 : index
    %c0_224 = arith.constant 0 : index
    %469 = vector.load %arg5[%c15_222, %c0_223, %c0_224] : memref<17x8x4xf32, #tpu.memory_space<vmem>>, vector<1x8x4xf32>
    %470 = vector.shape_cast %469 : vector<1x8x4xf32> to vector<8x4xf32>
    %c249_i32 = arith.constant 249 : i32
    %471 = tpu.dynamic_rotate %267 by %c249_i32 dim 1 : vector<4x256xf32>, i32 -> vector<4x256xf32>
    %c-7_i32 = arith.constant -7 : i32
    %472 = vector.broadcast %c-7_i32 : i32 to vector<1x256xi32>
    %473 = arith.cmpi sge, %0, %472 : vector<1x256xi32>
    %c121_i32 = arith.constant 121 : i32
    %474 = vector.broadcast %c121_i32 : i32 to vector<1x256xi32>
    %475 = arith.cmpi slt, %0, %474 : vector<1x256xi32>
    %476 = arith.andi %473, %475 : vector<1x256xi1>
    %cst_225 = arith.constant 0.000000e+00 : f32
    %477 = vector.shape_cast %476 : vector<1x256xi1> to vector<1x256xi1>
    %478 = vector.broadcast %477 : vector<1x256xi1> to vector<4x256xi1>
    %479 = vector.broadcast %cst_225 : f32 to vector<4x256xf32>
    %480 = arith.select %478, %471, %479 : vector<4x256xi1>, vector<4x256xf32>
    %cst_226 = arith.constant dense<0.000000e+00> : vector<8x256xf32>
    %481 = tpu.matmul %470, %480, %cst_226 {dimension_numbers = #tpu.dot_dimension_numbers<[1], [0], [0], [1], [0, 0, 1, 1], [], []>} : vector<8x4xf32>, vector<4x256xf32>, vector<8x256xf32> -> vector<8x256xf32>
    %482 = arith.addf %468, %481 : vector<8x256xf32>
    %c16_227 = arith.constant 16 : index
    %c0_228 = arith.constant 0 : index
    %c0_229 = arith.constant 0 : index
    %483 = vector.load %arg5[%c16_227, %c0_228, %c0_229] : memref<17x8x4xf32, #tpu.memory_space<vmem>>, vector<1x8x4xf32>
    %484 = vector.shape_cast %483 : vector<1x8x4xf32> to vector<8x4xf32>
    %c248_i32 = arith.constant 248 : i32
    %485 = tpu.dynamic_rotate %267 by %c248_i32 dim 1 : vector<4x256xf32>, i32 -> vector<4x256xf32>
    %c-8_i32 = arith.constant -8 : i32
    %486 = vector.broadcast %c-8_i32 : i32 to vector<1x256xi32>
    %487 = arith.cmpi sge, %0, %486 : vector<1x256xi32>
    %c120_i32 = arith.constant 120 : i32
    %488 = vector.broadcast %c120_i32 : i32 to vector<1x256xi32>
    %489 = arith.cmpi slt, %0, %488 : vector<1x256xi32>
    %490 = arith.andi %487, %489 : vector<1x256xi1>
    %cst_230 = arith.constant 0.000000e+00 : f32
    %491 = vector.shape_cast %490 : vector<1x256xi1> to vector<1x256xi1>
    %492 = vector.broadcast %491 : vector<1x256xi1> to vector<4x256xi1>
    %493 = vector.broadcast %cst_230 : f32 to vector<4x256xf32>
    %494 = arith.select %492, %485, %493 : vector<4x256xi1>, vector<4x256xf32>
    %cst_231 = arith.constant dense<0.000000e+00> : vector<8x256xf32>
    %495 = tpu.matmul %484, %494, %cst_231 {dimension_numbers = #tpu.dot_dimension_numbers<[1], [0], [0], [1], [0, 0, 1, 1], [], []>} : vector<8x4xf32>, vector<4x256xf32>, vector<8x256xf32> -> vector<8x256xf32>
    %496 = arith.addf %482, %495 : vector<8x256xf32>
    %cst_232 = arith.constant dense<0.000000e+00> : vector<8xf32>
    %497 = vector.multi_reduction <add>, %496, %cst_232 [1] : vector<8x256xf32> to vector<8xf32>
    %498 = vector.shape_cast %497 : vector<8xf32> to vector<8x1xf32>
    %cst_233 = arith.constant 3.906250e-03 : f32
    %499 = vector.broadcast %cst_233 : f32 to vector<8x1xf32>
    %500 = arith.mulf %498, %499 : vector<8x1xf32>
    %501 = vector.broadcast %500 : vector<8x1xf32> to vector<8x256xf32>
    %502 = arith.subf %496, %501 : vector<8x256xf32>
    %503 = arith.mulf %502, %502 : vector<8x256xf32>
    %cst_234 = arith.constant dense<0.000000e+00> : vector<8xf32>
    %504 = vector.multi_reduction <add>, %503, %cst_234 [1] : vector<8x256xf32> to vector<8xf32>
    %505 = vector.shape_cast %504 : vector<8xf32> to vector<8x1xf32>
    %cst_235 = arith.constant 3.906250e-03 : f32
    %506 = vector.broadcast %cst_235 : f32 to vector<8x1xf32>
    %507 = arith.mulf %505, %506 : vector<8x1xf32>
    %c0_236 = arith.constant 0 : index
    %c0_237 = arith.constant 0 : index
    %508 = vector.load %arg10[%c0_236, %c0_237] : memref<8x1xf32, #tpu.memory_space<vmem>>, vector<8x1xf32>
    %cst_238 = arith.constant 9.99999974E-6 : f32
    %509 = vector.broadcast %cst_238 : f32 to vector<8x1xf32>
    %510 = arith.addf %507, %509 : vector<8x1xf32>
    %511 = math.rsqrt %510 : vector<8x1xf32>
    %512 = arith.mulf %508, %511 : vector<8x1xf32>
    %513 = vector.broadcast %512 : vector<8x1xf32> to vector<8x256xf32>
    %514 = arith.mulf %502, %513 : vector<8x256xf32>
    %c0_239 = arith.constant 0 : index
    %c0_240 = arith.constant 0 : index
    %515 = vector.load %arg11[%c0_239, %c0_240] : memref<8x1xf32, #tpu.memory_space<vmem>>, vector<8x1xf32>
    %516 = vector.broadcast %515 : vector<8x1xf32> to vector<8x256xf32>
    %517 = arith.addf %514, %516 : vector<8x256xf32>
    %518 = arith.addf %25, %517 : vector<8x256xf32>
    %cst_241 = arith.constant 0.000000e+00 : f32
    %519 = vector.broadcast %cst_241 : f32 to vector<8x256xf32>
    %520 = arith.maximumf %518, %519 : vector<8x256xf32>
    %c0_242 = arith.constant 0 : index
    %c0_243 = arith.constant 0 : index
    %521 = vector.load %arg12[%c0_242, %c0_243] : memref<8x256xf32, #tpu.memory_space<vmem>>, vector<8x256xf32>
    tpu.vector_store %arg12[%c0_242, %c0_243], %520 {strides = array<i32>} : memref<8x256xf32, #tpu.memory_space<vmem>>, vector<8x256xf32>,
    return
  }
}

</mosaic_0001>

<bundles_post_ra>
// kernel: resnet_block_forward.1
= control target key start
LH: loop header
LB: loop body
LE: loop exit
PB: predicated region body
PF: predicated region fallthrough
CT: control target
= control target key end

     0   :  { %s3834_s25 = smov 4   ;;  %vm4753_vm0 = vcmask 1043456   ;;  %v3835_v4 = vmov 0.0   ;;  %v3836_v5 = vmov 0   ;;  %s4727_s0 = inlined_call_operand.vmem [shape: s32[1,256], index: 0, kind: input, shape index: {}]   ;;  %s4728_s1 = inlined_call_operand.vmem [shape: f32[4,256], index: 1, kind: input, shape index: {}]   ;;  %s4729_s2 = inlined_call_operand.vmem [shape: f32[4,256], index: 2, kind: input, shape index: {}]   ;;  %s4730_s3 = inlined_call_operand.vmem [shape: f32[8,4], index: 3, kind: input, shape index: {}]   ;;  %s4731_s4 = inlined_call_operand.vmem [shape: f32[17,4,4], index: 4, kind: input, shape index: {}]   ;;  %s4732_s5 = inlined_call_operand.vmem [shape: f32[17,8,4], index: 5, kind: input, shape index: {}]   ;;  %s4733_s6 = inlined_call_operand.vmem [shape: f32[8,1], index: 6, kind: input, shape index: {}]   ;;  %s4734_s7 = inlined_call_operand.vmem [shape: f32[8,1], index: 7, kind: input, shape index: {}]   ;;  %s4735_s8 = inlined_call_operand.vmem [shape: f32[4,1], index: 8, kind: input, shape index: {}]   ;;  %s4736_s9 = inlined_call_operand.vmem [shape: f32[4,1], index: 9, kind: input, shape index: {}]   ;;  %s4737_s10 = inlined_call_operand.vmem [shape: f32[8,1], index: 10, kind: input, shape index: {}]   ;;  %s4738_s11 = inlined_call_operand.vmem [shape: f32[8,1], index: 11, kind: input, shape index: {}]   ;;  %s4739_s12 = inlined_call_operand.hbm [shape: f32[8,256], index: 12, kind: output, shape index: {}]  }
   0x1   :  { %v3921_v0 = vld [vmem:[%s4729_s2] sm:$0xff]  ;;  %272 = vmatprep.mubr.f32.mxu1 %v3835_v4  ;;  %3799 = vset.pattern.permute.xlu0 %v3836_v5 }
   0x2   :  { %v3926_v1 = vld [vmem:[%s4728_s1] sm:$0xff]  ;;  %189 = vrot.lane.b32.xlu0 %v3921_v0, %s3834_s25  ;;  %v3934_v2 = vcombine.high %v3921_v0, %v3921_v0  ;;  %3800 = vset.pattern.permute.xlu1 %v3836_v5 }
   0x3   :  { %160 = vrot.lane.b32.xlu1 %v3926_v1, %s3834_s25  ;;  %v3938_v3 = vcombine.high %v3926_v1, %v3926_v1  ;;  %121 = vmatprep.mubr.f32.mxu0 %v3835_v4 }
   0x5   :  { %3579 = vmatprep.subr.msk.mxu0 %vm4753_vm0, %v3938_v3 }
   0x6   :  { %3580 = vmatpush1.msk.msra.mxu0 %vm4753_vm0, %v3926_v1 }
   0x7   :  { %17 = vsyncpa [#allocation3], 0  ;;  %191 = vrot.lane.b32.xlu0 %v3934_v2, %s3834_s25  ;;  %162 = vrot.lane.b32.xlu1 %v3938_v3, %s3834_s25  ;;  %s3837_s1 = smov 3   ;;  %s3838_s2 = smov 2   ;;  %v164_v6 = vlaneseq  ;;  %v4007_v7 = vld [vmem:[%s4727_s0] sm:$0x3] }
   0x8   :  { %s3839_s26 = smov 1   ;;  %s3840_s27 = smov 127   ;;  %vm169_vm1 = vcmp.ge.s32.totalorder %v4007_v7, 4  ;;  %vm170_vm2 = vcmp.lt.s32.totalorder %v4007_v7, 132  ;;  %vm366_vm4 = vcmp.ge.s32.totalorder %v4007_v7, 3  ;;  %vm367_vm5 = vcmp.lt.s32.totalorder %v4007_v7, 131 }
   0x9   :  { %s3841_s28 = smov 126   ;;  %s3842_s29 = smov 125   ;;  %v174_v8 = vshrl.u32 %v164_v6, 7  ;;  %vm171_vm3 = vmand %vm169_vm1, %vm170_vm2  ;;  %v4018_v12 = vand.u32 127, %v164_v6  ;;  %vm4752_vm10 = vcmask 31744   ;;  %vm565_vm13 = vcmp.ge.s32.totalorder %v4007_v7, 2 }
   0xa   :  { %s3843_s30 = smov 124   ;;  %v172_v11 = vsel %vm171_vm3, 1, %v3836_v5  ;;  %vm368_vm6 = vmand %vm366_vm4, %vm367_vm5  ;;  %v3582_v30 = vld [vmem:[%s4731_s4 + $0x4] sm:$0xf]  ;;  %vm566_vm14 = vcmp.lt.s32.totalorder %v4007_v7, 130  ;;  %vm764_vm4 = vcmp.ge.s32.totalorder %v4007_v7, 1 }
   0xb   :  { %359 = vrot.lane.b32.xlu0 %v3926_v1, %s3837_s1  ;;  %361 = vrot.lane.b32.xlu1 %v3938_v3, %s3837_s1  ;;  %v4013_v9 = vsub.s32 0, %v174_v8  ;;  %v4015_v10 = vsub.s32 1, %v174_v8  ;;  %v369_v17 = vsel %vm368_vm6, 1, %v3836_v5  ;;  %vm4743_vm7 = vcmp.lt.s32.totalorder %v4018_v12, 4  ;;  %vm567_vm15 = vmand %vm565_vm13, %vm566_vm14  ;;  %v185_v43 = vld [vmem:[%s4731_s4] sm:$0xf] }
   0xc   :  { %vm4742_vm11 = vcmp.lt.s32.totalorder %v4018_v12, 3  ;;  %v568_v44 = vsel %vm567_vm15, 1, %v3836_v5  ;;  %vm4741_vm2 = vcmp.lt.s32.totalorder %v4018_v12, 2  ;;  %v3589_v53 = vld [vmem:[%s4731_s4 + $0x8] sm:$0xf]  ;;  %vm765_vm5 = vcmp.lt.s32.totalorder %v4007_v7, 129 }
   0xd   :  { %v176_v13 = vrot.slane %v172_v11, %v4013_v9  ;;  %v180_v14 = vrot.slane %v172_v11, %v4015_v10  ;;  %v377_v20 = vrot.slane %v369_v17, %v4015_v10  ;;  %v373_v35 = vrot.slane %v369_v17, %v4013_v9  ;;  %vm766_vm6 = vmand %vm764_vm4, %vm765_vm5  ;;  %v3593_v62 = vld [vmem:[%s4731_s4 + $0xc] sm:$0xf]  ;;  %s3847_s18 = smov 6   ;;  %s3848_s19 = smov 123  }
   0xe   :  { %v576_v47 = vrot.slane %v568_v44, %v4015_v10  ;;  %v572_v55 = vrot.slane %v568_v44, %v4013_v9  ;;  %v767_v63 = vsel %vm766_vm6, 1, %v3836_v5  ;;  %vm4740_vm14 = vcmp.lt.s32.totalorder %v4018_v12, 1  ;;  %s3849_s20 = smov 122   ;;  %v3668_v39 = vld [vmem:[%s4732_s5 + $0x28] sm:$0xff] }
   0xf   :  { %466 = vrot.lane.b32.xlu0 %v3921_v0, %s3837_s1  ;;  %468 = vrot.lane.b32.xlu1 %v3934_v2, %s3837_s1  ;;  %vm4024_vm8 = vcmp.eq.s32.totalorder %v176_v13, 1  ;;  %vm4028_vm9 = vcmp.eq.s32.totalorder %v180_v14, 1  ;;  %vm4054_vm12 = vcmp.eq.s32.totalorder %v377_v20, 1  ;;  %vm4073_vm1 = vcmp.eq.s32.totalorder %v373_v35, 1  ;;  %v3597_v20 = vld [vmem:[%s4731_s4 + $0x10] sm:$0xf] }
  0x10   :  { %vm4097_vm3 = vcmp.eq.s32.totalorder %v576_v47, 1  ;;  %vm4117_vm13 = vcmp.eq.s32.totalorder %v572_v55, 1  ;;  %v775_v11 = vrot.slane %v767_v63, %v4015_v10  ;;  %v4772_v17 = vmov 0 }
  0x11   :  { %vm1123_vm5 = vcmp.ge.s32.totalorder %v4007_v7, 4294967295  ;;  %vm1124_vm6 = vcmp.lt.s32.totalorder %v4007_v7, 127  ;;  %v4778_v47 = vmov 0 }
  0x12   :  { %vm4141_vm15 = vcmp.eq.s32.totalorder %v775_v11, 1 }
  0x13   :  { %558 = vrot.lane.b32.xlu0 %v3926_v1, %s3838_s2  ;;  %560 = vrot.lane.b32.xlu1 %v3938_v3, %s3838_s2  ;;  %v4773_v17 = vsel %vm4141_vm15, 4294967295, %v4772_v17 }
  0x17   :  { %665 = vrot.lane.b32.xlu0 %v3921_v0, %s3838_s2  ;;  %667 = vrot.lane.b32.xlu1 %v3934_v2, %s3838_s2 }
  0x1b   :  { %757 = vrot.lane.b32.xlu0 %v3926_v1, %s3839_s26  ;;  %759 = vrot.lane.b32.xlu1 %v3938_v3, %s3839_s26 }
  0x1f   :  { %864 = vrot.lane.b32.xlu0 %v3921_v0, %s3839_s26  ;;  %866 = vrot.lane.b32.xlu1 %v3934_v2, %s3839_s26 }
  0x23   :  { %1116 = vrot.lane.b32.xlu0 %v3926_v1, %s3840_s27  ;;  %1118 = vrot.lane.b32.xlu1 %v3938_v3, %s3840_s27 }
  0x27   :  { %1223 = vrot.lane.b32.xlu0 %v3921_v0, %s3840_s27  ;;  %1225 = vrot.lane.b32.xlu1 %v3934_v2, %s3840_s27 }
  0x2b   :  { %1315 = vrot.lane.b32.xlu0 %v3926_v1, %s3841_s28  ;;  %1317 = vrot.lane.b32.xlu1 %v3938_v3, %s3841_s28 }
  0x2f   :  { %1422 = vrot.lane.b32.xlu0 %v3921_v0, %s3841_s28  ;;  %1424 = vrot.lane.b32.xlu1 %v3934_v2, %s3841_s28 }
  0x33   :  { %1514 = vrot.lane.b32.xlu0 %v3926_v1, %s3842_s29  ;;  %1516 = vrot.lane.b32.xlu1 %v3938_v3, %s3842_s29 }
  0x37   :  { %1621 = vrot.lane.b32.xlu0 %v3921_v0, %s3842_s29  ;;  %1623 = vrot.lane.b32.xlu1 %v3934_v2, %s3842_s29 }
  0x3b   :  { %1713 = vrot.lane.b32.xlu0 %v3926_v1, %s3843_s30  ;;  %1715 = vrot.lane.b32.xlu1 %v3938_v3, %s3843_s30 }
  0x74   :  { %v190_v15 = vpop.permute.xlu0 %189 }
  0x75   :  { %v161_v16 = vpop.permute.xlu1 %160 }
  0x79   :  { %v192_v21 = vpop.permute.xlu0 %191  ;;  %v163_v22 = vpop.permute.xlu1 %162 }
  0x7a   :  { %v194_v23 = vsel %vm4743_vm7, %v192_v21, %v190_v15  ;;  %v167_v24 = vsel %vm4743_vm7, %v161_v16, %v163_v22  ;;  %v168_v25 = vsel %vm4743_vm7, %v163_v22, %v161_v16  ;;  %v193_v26 = vsel %vm4743_vm7, %v190_v15, %v192_v21 }
  0x7b   :  { %v184_v27 = vsel %vm4028_vm9, %v167_v24, 0.0  ;;  %v196_v28 = vsel %vm4028_vm9, %v193_v26, 0.0  ;;  %v195_v29 = vsel %vm4024_vm8, %v194_v23, 0.0  ;;  %v183_v31 = vsel %vm4024_vm8, %v168_v25, 0.0 }
  0x7c   :  { %3583 = vmatprep.subr.msk.mxu1 %vm4753_vm0, %v196_v28  ;;  %v771_v22 = vrot.slane %v767_v63, %v4013_v9 }
  0x7d   :  { %3584 = vmatpush1.msk.msra.mxu1 %vm4753_vm0, %v195_v29  ;;  %v360_v33 = vpop.permute.xlu0 %359  ;;  %v362_v34 = vpop.permute.xlu1 %361  ;;  %v3601_v29 = vld [vmem:[%s4731_s4 + $0x14] sm:$0xf] }
  0x7e   :  { %3585 = vmatmul.mubr.msk.f32.vlgmr.msra.gmra.mrb[0].mxu1 %vm4752_vm10, %v3582_v30  ;;  %3586 = vmatprep.subr.msk.mxu1 %vm4753_vm0, %v184_v27  ;;  %v364_v36 = vsel %vm4742_vm11, %v360_v33, %v362_v34  ;;  %v365_v38 = vsel %vm4742_vm11, %v362_v34, %v360_v33  ;;  %vm4159_vm4 = vcmp.eq.s32.totalorder %v771_v22, 1  ;;  %v4774_v27 = vmov 0  ;;  %v3605_v34 = vld [vmem:[%s4731_s4 + $0x18] sm:$0xf] }
  0x7f   :  { %3587 = vmatpush1.msk.msra.mxu1 %vm4753_vm0, %v183_v31  ;;  %352 = vmatprep.mubr.f32.mxu1 %v3835_v4  ;;  %v381_v37 = vsel %vm4054_vm12, %v364_v36, 0.0  ;;  %v380_v45 = vsel %vm4073_vm1, %v365_v38, 0.0  ;;  %v4775_v27 = vsel %vm4159_vm4, 4294967295, %v4774_v27  ;;  %v3609_v36 = vld [vmem:[%s4731_s4 + $0x1c] sm:$0xf] }
  0x80   :  { %3590 = vmatprep.subr.msk.mxu1 %vm4753_vm0, %v381_v37 }
  0x81   :  { %v467_v40 = vpop.permute.xlu0 %466  ;;  %v469_v41 = vpop.permute.xlu1 %468 }
  0x82   :  { %v470_v42 = vsel %vm4742_vm11, %v467_v40, %v469_v41  ;;  %v471_v50 = vsel %vm4742_vm11, %v469_v41, %v467_v40 }
  0x83   :  { %v473_v46 = vsel %vm4054_vm12, %v470_v42, 0.0  ;;  %v472_v54 = vsel %vm4073_vm1, %v471_v50, 0.0  ;;  %v4776_v42 = vmov 0 }
  0x85   :  { %v559_v48 = vpop.permute.xlu0 %558  ;;  %v561_v49 = vpop.permute.xlu1 %560 }
  0x86   :  { %3588 = vmatmul.mubr.msk.f32.vlgmr.msra.gmra.mrb[0].mxu1 %vm4752_vm10, %v185_v43  ;;  %v563_v51 = vsel %vm4741_vm2, %v559_v48, %v561_v49  ;;  %v564_v59 = vsel %vm4741_vm2, %v561_v49, %v559_v48 }
  0x87   :  { %3591 = vmatpush1.msk.msra.mxu1 %vm4753_vm0, %v380_v45  ;;  %457 = vmatprep.mubr.f32.mxu1 %v3835_v4  ;;  %v580_v56 = vsel %vm4097_vm3, %v563_v51, 0.0  ;;  %v579_v6 = vsel %vm4117_vm13, %v564_v59, 0.0  ;;  %v3621_v59 = vld [vmem:[%s4731_s4 + $0x28] sm:$0xf] }
  0x88   :  { %3594 = vmatprep.subr.msk.mxu1 %vm4753_vm0, %v473_v46 }
  0x89   :  { %v666_v57 = vpop.permute.xlu0 %665  ;;  %v668_v58 = vpop.permute.xlu1 %667 }
  0x8a   :  { %v669_v61 = vsel %vm4741_vm2, %v666_v57, %v668_v58  ;;  %v670_v15 = vsel %vm4741_vm2, %v668_v58, %v666_v57  ;;  %vm4744_vm2 = vcmp.lt.s32.totalorder %v4018_v12, 127  ;;  %v4780_v58 = vmov 0 }
  0x8b   :  { %v672_v8 = vsel %vm4097_vm3, %v669_v61, 0.0  ;;  %v671_v21 = vsel %vm4117_vm13, %v670_v15, 0.0  ;;  %v3625_v15 = vld [vmem:[%s4731_s4 + $0x2c] sm:$0xf] }
  0x8d   :  { %v758_v13 = vpop.permute.xlu0 %757  ;;  %v760_v14 = vpop.permute.xlu1 %759 }
  0x8e   :  { %3592 = vmatmul.mubr.msk.f32.vlgmr.msra.gmra.mrb[0].mxu1 %vm4752_vm10, %v3589_v53  ;;  %v762_v16 = vsel %vm4740_vm14, %v758_v13, %v760_v14  ;;  %v763_v26 = vsel %vm4740_vm14, %v760_v14, %v758_v13  ;;  %v4783_v13 = vmov 0 }
  0x8f   :  { %3595 = vmatpush1.msk.msra.mxu1 %vm4753_vm0, %v472_v54  ;;  %549 = vmatprep.mubr.f32.mxu1 %v3835_v4  ;;  %v779_v23 = vsel %vm4141_vm15, %v762_v16, 0.0  ;;  %v778_v30 = vsel %vm4159_vm4, %v763_v26, 0.0 }
  0x90   :  { %3598 = vmatprep.subr.msk.mxu1 %vm4753_vm0, %v580_v56 }
  0x91   :  { %v865_v24 = vpop.permute.xlu0 %864  ;;  %v867_v25 = vpop.permute.xlu1 %866 }
  0x92   :  { %v868_v28 = vsel %vm4740_vm14, %v865_v24, %v867_v25  ;;  %v869_v33 = vsel %vm4740_vm14, %v867_v25, %v865_v24  ;;  %vm1125_vm14 = vmand %vm1123_vm5, %vm1124_vm6  ;;  %vm1322_vm5 = vcmp.ge.s32.totalorder %v4007_v7, 4294967294  ;;  %vm1323_vm6 = vcmp.lt.s32.totalorder %v4007_v7, 126 }
  0x93   :  { %v871_v31 = vsel %vm4141_vm15, %v868_v28, 0.0  ;;  %v870_v35 = vsel %vm4159_vm4, %v869_v33, 0.0  ;;  %v1126_v37 = vsel %vm1125_vm14, 1, %v3836_v5  ;;  %vm1324_vm11 = vmand %vm1322_vm5, %vm1323_vm6  ;;  %vm4745_vm5 = vcmp.lt.s32.totalorder %v4018_v12, 126 }
  0x94   :  { %v1134_v38 = vrot.slane %v1126_v37, %v4015_v10  ;;  %v1130_v43 = vrot.slane %v1126_v37, %v4013_v9  ;;  %v1325_v49 = vsel %vm1324_vm11, 1, %v3836_v5  ;;  %vm1521_vm6 = vcmp.ge.s32.totalorder %v4007_v7, 4294967293 }
  0x95   :  { %v1117_v40 = vpop.permute.xlu0 %1116  ;;  %v1333_v53 = vrot.slane %v1325_v49, %v4015_v10  ;;  %v4787_v28 = vmov 0  ;;  %v4789_v37 = vmov 0 }
  0x96   :  { %3596 = vmatmul.mubr.msk.f32.vlgmr.msra.gmra.mrb[0].mxu1 %vm4752_vm10, %v3593_v62  ;;  %vm4204_vm14 = vcmp.eq.s32.totalorder %v1134_v38, 1  ;;  %vm4223_vm7 = vcmp.eq.s32.totalorder %v1130_v43, 1  ;;  %v1329_v62 = vrot.slane %v1325_v49, %v4013_v9 }
  0x97   :  { %3599 = vmatpush1.msk.msra.mxu1 %vm4753_vm0, %v579_v6  ;;  %656 = vmatprep.mubr.f32.mxu1 %v3835_v4  ;;  %v4777_v42 = vsel %vm4204_vm14, 4294967295, %v4776_v42  ;;  %v4779_v47 = vsel %vm4223_vm7, 4294967295, %v4778_v47  ;;  %vm4247_vm11 = vcmp.eq.s32.totalorder %v1333_v53, 1 }
  0x98   :  { %3602 = vmatprep.subr.msk.mxu1 %vm4753_vm0, %v672_v8  ;;  %v4781_v58 = vsel %vm4247_vm11, 4294967295, %v4780_v58 }
  0x9e   :  { %3600 = vmatmul.mubr.msk.f32.vlgmr.msra.gmra.mrb[0].mxu1 %vm4752_vm10, %v3597_v20 }
  0x9f   :  { %3603 = vmatpush1.msk.msra.mxu1 %vm4753_vm0, %v671_v21  ;;  %748 = vmatprep.mubr.f32.mxu1 %v3835_v4 }
  0xa0   :  { %3606 = vmatprep.subr.msk.mxu1 %vm4753_vm0, %v779_v23 }
  0xa6   :  { %3604 = vmatmul.mubr.msk.f32.vlgmr.msra.gmra.mrb[0].mxu1 %vm4752_vm10, %v3601_v29  ;;  %v3629_v29 = vld [vmem:[%s4731_s4 + $0x30] sm:$0xf] }
  0xa7   :  { %3607 = vmatpush1.msk.msra.mxu1 %vm4753_vm0, %v778_v30  ;;  %855 = vmatprep.mubr.f32.mxu1 %v3835_v4 }
  0xa8   :  { %3610 = vmatprep.subr.msk.mxu1 %vm4753_vm0, %v871_v31 }
  0xae   :  { %3608 = vmatmul.mubr.msk.f32.vlgmr.msra.gmra.mrb[0].mxu1 %vm4752_vm10, %v3605_v34 }
  0xaf   :  { %3611 = vmatpush1.msk.msra.mxu1 %vm4753_vm0, %v870_v35  ;;  %947 = vmatprep.mubr.f32.mxu1 %v3835_v4 }
  0xb0   :  { %3614 = vmatprep.subr.msk.mxu1 %vm4753_vm0, %v3938_v3  ;;  %v1119_v3 = vpop.permute.xlu1 %1118 }
  0xb1   :  { %v1122_v41 = vsel %vm4744_vm2, %v1119_v3, %v1117_v40  ;;  %v1121_v46 = vsel %vm4744_vm2, %v1117_v40, %v1119_v3  ;;  %v3633_v40 = vld [vmem:[%s4731_s4 + $0x34] sm:$0xf] }
  0xb2   :  { %v1138_v44 = vsel %vm4204_vm14, %v1122_v41, 0.0  ;;  %v1137_v50 = vsel %vm4223_vm7, %v1121_v46, 0.0 }
  0xb4   :  { %v1226_v45 = vpop.permute.xlu1 %1225 }
  0xb6   :  { %3612 = vmatmul.mubr.msk.f32.vlgmr.msra.gmra.mrb[0].mxu1 %vm4752_vm10, %v3609_v36 }
  0xb7   :  { %3615 = vmatpush1.msk.msra.mxu1 %vm4753_vm0, %v3926_v1  ;;  %1025 = vmatprep.mubr.f32.mxu1 %v3835_v4  ;;  %v3613_v1 = vld [vmem:[%s4731_s4 + $0x20] sm:$0xf] }
  0xb8   :  { %3618 = vmatprep.subr.msk.mxu1 %vm4753_vm0, %v3934_v2  ;;  %v1224_v2 = vpop.permute.xlu0 %1223  ;;  %v1318_v55 = vpop.permute.xlu1 %1317 }
  0xb9   :  { %v1228_v48 = vsel %vm4744_vm2, %v1226_v45, %v1224_v2  ;;  %v1227_v56 = vsel %vm4744_vm2, %v1224_v2, %v1226_v45  ;;  %vm1522_vm2 = vcmp.lt.s32.totalorder %v4007_v7, 125 }
  0xba   :  { %v1230_v51 = vsel %vm4204_vm14, %v1228_v48, 0.0  ;;  %v1229_v61 = vsel %vm4223_vm7, %v1227_v56, 0.0  ;;  %vm4782_vm7 = vcmp.lt.s32.totalorder %v4018_v12, 126  ;;  %vm4267_vm14 = vcmp.eq.s32.totalorder %v1329_v62, 1 }
  0xbb   :  { %v4784_v13 = vsel %vm4267_vm14, 4294967295, %v4783_v13  ;;  %vm4785_vm4 = vmmov %vm4782_vm7  ;;  %v4791_v48 = vmov 0 }
  0xbc   :  { %v1316_v54 = vpop.permute.xlu0 %1315  ;;  %v1425_v8 = vpop.permute.xlu1 %1424 }
  0xbd   :  { %v1321_v57 = vsel %vm4745_vm5, %v1318_v55, %v1316_v54  ;;  %vm1523_vm5 = vmand %vm1521_vm6, %vm1522_vm2  ;;  %v1320_v11 = vsel %vm4782_vm7, %v1316_v54, %v1318_v55  ;;  %vm4751_vm7 = vcmp.lt.s32.totalorder %v4018_v12, 125  ;;  %vm1721_vm6 = vcmp.lt.s32.totalorder %v4007_v7, 124  ;;  %v3641_v55 = vld [vmem:[%s4731_s4 + $0x3c] sm:$0xf] }
  0xbe   :  { %3616 = vmatmul.mubr.msk.f32.vlgmr.msra.gmra.mrb[0].mxu1 %vm4752_vm10, %v3613_v1  ;;  %v1337_v63 = vsel %vm4247_vm11, %v1321_v57, 0.0  ;;  %v1524_v16 = vsel %vm1523_vm5, 1, %v3836_v5  ;;  %v1336_v20 = vsel %vm4267_vm14, %v1320_v11, 0.0  ;;  %vm4786_vm2 = vmmov %vm4785_vm4  ;;  %vm1720_vm5 = vcmp.ge.s32.totalorder %v4007_v7, 4294967292  ;;  %v3645_v57 = vld [vmem:[%s4731_s4 + $0x40] sm:$0xf] }
  0xbf   :  { %3619 = vmatpush1.msk.msra.mxu1 %vm4753_vm0, %v3921_v0  ;;  %1107 = vmatprep.mubr.f32.mxu1 %v3835_v4  ;;  %v3617_v0 = vld [vmem:[%s4731_s4 + $0x24] sm:$0xf]  ;;  %v1532_v22 = vrot.slane %v1524_v16, %v4015_v10  ;;  %v1528_v31 = vrot.slane %v1524_v16, %v4013_v9  ;;  %v4793_v54 = vmov 0 }
  0xc0   :  { %3622 = vmatprep.subr.msk.mxu1 %vm4753_vm0, %v1138_v44  ;;  %v1423_v6 = vpop.permute.xlu0 %1422  ;;  %v1517_v24 = vpop.permute.xlu1 %1516 }
  0xc1   :  { %v1427_v14 = vsel %vm4785_vm4, %v1425_v8, %v1423_v6  ;;  %v1426_v25 = vsel %vm4786_vm2, %v1423_v6, %v1425_v8  ;;  %vm4291_vm4 = vcmp.eq.s32.totalorder %v1532_v22, 1  ;;  %vm1722_vm2 = vmand %vm1720_vm5, %vm1721_vm6  ;;  %vm4750_vm5 = vcmp.lt.s32.totalorder %v4018_v12, 124 }
  0xc2   :  { %v1429_v21 = vsel %vm4247_vm11, %v1427_v14, 0.0  ;;  %v4788_v28 = vsel %vm4291_vm4, 4294967295, %v4787_v28  ;;  %v1428_v30 = vsel %vm4267_vm14, %v1426_v25, 0.0  ;;  %vm4311_vm14 = vcmp.eq.s32.totalorder %v1528_v31, 1  ;;  %v45_v25 = vld [vmem:[%s4730_s3] sm:$0xff]  ;;  %s3844_s3 = smov 5  }
  0xc3   :  { %v4790_v37 = vsel %vm4311_vm14, 4294967295, %v4789_v37  ;;  %v1723_v3 = vsel %vm1722_vm2, 1, %v3836_v5  ;;  %3581 = vmatmul.mubr.msk.f32.vlgmr.msra.gmra.mrb[0].mxu0 %vm4752_vm10, %v45_v25  ;;  %v1836_v31 = vld [vmem:[%s4735_s8] sm:$0xf]  ;;  %s3846_s8 = smov 8  }
  0xc4   :  { %v1515_v23 = vpop.permute.xlu0 %1514  ;;  %v1624_v35 = vpop.permute.xlu1 %1623  ;;  %v1731_v43 = vrot.slane %v1723_v3, %v4015_v10  ;;  %1979 = vmatprep.mubr.f32.mxu0 %v3835_v4 }
  0xc5   :  { %v1520_v26 = vsel %vm4751_vm7, %v1517_v24, %v1515_v23  ;;  %v1519_v36 = vsel %vm4751_vm7, %v1515_v23, %v1517_v24  ;;  %v1847_v24 = vld [vmem:[%s4736_s9] sm:$0xf]  ;;  %s3845_s9 = smov 7  }
  0xc6   :  { %3620 = vmatmul.mubr.msk.f32.vlgmr.msra.gmra.mrb[0].mxu1 %vm4752_vm10, %v3617_v0  ;;  %v1536_v33 = vsel %vm4291_vm4, %v1520_v26, 0.0  ;;  %v1535_v41 = vsel %vm4311_vm14, %v1519_v36, 0.0  ;;  %vm4335_vm6 = vcmp.eq.s32.totalorder %v1731_v43, 1  ;;  %v3637_v0 = vld [vmem:[%s4731_s4 + $0x38] sm:$0xf] }
  0xc7   :  { %3623 = vmatpush1.msk.msra.mxu1 %vm4753_vm0, %v1137_v50  ;;  %1214 = vmatprep.mubr.f32.mxu1 %v3835_v4  ;;  %v4792_v48 = vsel %vm4335_vm6, 4294967295, %v4791_v48  ;;  %v1727_v50 = vrot.slane %v1723_v3, %v4013_v9 }
  0xc8   :  { %3626 = vmatprep.subr.msk.mxu1 %vm4753_vm0, %v1230_v51  ;;  %v1622_v34 = vpop.permute.xlu0 %1621  ;;  %v1716_v2 = vpop.permute.xlu1 %1715 }
  0xc9   :  { %v1626_v38 = vsel %vm4751_vm7, %v1624_v35, %v1622_v34  ;;  %v1625_v45 = vsel %vm4751_vm7, %v1622_v34, %v1624_v35  ;;  %vm4353_vm2 = vcmp.eq.s32.totalorder %v1727_v50, 1  ;;  %vm1891_vm7 = vcmp.lt.s32.totalorder %v4007_v7, 135 }
  0xca   :  { %v1628_v1 = vsel %vm4291_vm4, %v1626_v38, 0.0  ;;  %v1627_v49 = vsel %vm4311_vm14, %v1625_v45, 0.0  ;;  %v4794_v54 = vsel %vm4353_vm2, 4294967295, %v4793_v54  ;;  %vm1887_vm14 = vcmp.lt.s32.totalorder %v4018_v12, 7 }
  0xcc   :  { %v1714_v44 = vpop.permute.xlu0 %1713 }
  0xcd   :  { %v1719_v46 = vsel %vm4750_vm5, %v1716_v2, %v1714_v44  ;;  %v1718_v53 = vsel %vm4750_vm5, %v1714_v44, %v1716_v2  ;;  %vm1890_vm5 = vcmp.ge.s32.totalorder %v4007_v7, 7 }
  0xce   :  { %3624 = vmatmul.mubr.msk.f32.vlgmr.msra.gmra.mrb[0].mxu1 %vm4752_vm10, %v3621_v59  ;;  %v1735_v51 = vsel %vm4335_vm6, %v1719_v46, 0.0  ;;  %v1734_v56 = vsel %vm4353_vm2, %v1718_v53, 0.0  ;;  %vm1866_vm2 = vcmp.lt.s32.totalorder %v4007_v7, 136 }
  0xcf   :  { %3627 = vmatpush1.msk.msra.mxu1 %vm4753_vm0, %v1229_v61  ;;  %1306 = vmatprep.mubr.f32.mxu1 %v3835_v4 }
  0xd0   :  { %3630 = vmatprep.subr.msk.mxu1 %vm4753_vm0, %v1337_v63 }
  0xd6   :  { %3628 = vmatmul.mubr.msk.f32.vlgmr.msra.gmra.mrb[0].mxu1 %vm4752_vm10, %v3625_v15 }
  0xd7   :  { %3631 = vmatpush1.msk.msra.mxu1 %vm4753_vm0, %v1336_v20  ;;  %1413 = vmatprep.mubr.f32.mxu1 %v3835_v4 }
  0xd8   :  { %3634 = vmatprep.subr.msk.mxu1 %vm4753_vm0, %v1429_v21 }
  0xde   :  { %3632 = vmatmul.mubr.msk.f32.vlgmr.msra.gmra.mrb[0].mxu1 %vm4752_vm10, %v3629_v29 }
  0xdf   :  { %3635 = vmatpush1.msk.msra.mxu1 %vm4753_vm0, %v1428_v30  ;;  %1505 = vmatprep.mubr.f32.mxu1 %v3835_v4 }
  0xe0   :  { %3638 = vmatprep.subr.msk.mxu1 %vm4753_vm0, %v1536_v33 }
  0xe6   :  { %3636 = vmatmul.mubr.msk.f32.vlgmr.msra.gmra.mrb[0].mxu1 %vm4752_vm10, %v3633_v40 }
  0xe7   :  { %3639 = vmatpush1.msk.msra.mxu1 %vm4753_vm0, %v1535_v41  ;;  %1612 = vmatprep.mubr.f32.mxu1 %v3835_v4 }
  0xe8   :  { %3642 = vmatprep.subr.msk.mxu1 %vm4753_vm0, %v1628_v1 }
  0xee   :  { %3640 = vmatmul.mubr.msk.f32.vlgmr.msra.gmra.mrb[0].mxu1 %vm4752_vm10, %v3637_v0 }
  0xef   :  { %3643 = vmatpush1.msk.msra.mxu1 %vm4753_vm0, %v1627_v49  ;;  %1704 = vmatprep.mubr.f32.mxu1 %v3835_v4 }
  0xf0   :  { %3646 = vmatprep.subr.msk.mxu1 %vm4753_vm0, %v1735_v51 }
  0xf6   :  { %3644 = vmatmul.mubr.msk.f32.vlgmr.msra.gmra.mrb[0].mxu1 %vm4752_vm10, %v3641_v55 }
  0xf7   :  { %3647 = vmatpush1.msk.msra.mxu1 %vm4753_vm0, %v1734_v56  ;;  %1811 = vmatprep.mubr.f32.mxu1 %v3835_v4 }
  0xfe   :  { %3648 = vmatmul.mubr.msk.f32.vlgmr.msra.gmra.mrb[0].mxu1 %vm4752_vm10, %v3645_v57  ;;  %vm1892_vm10 = vmand %vm1890_vm5, %vm1891_vm7  ;;  %vm2076_vm7 = vcmp.lt.s32.totalorder %v4007_v7, 134 }
  0xff   :  { %v1893_v46 = vsel %vm1892_vm10, 1, %v3836_v5  ;;  %vm2075_vm10 = vcmp.ge.s32.totalorder %v4007_v7, 6 }
 0x100   :  { %v1897_v0 = vrot.slane %v1893_v46, %v4013_v9  ;;  %v1901_v49 = vrot.slane %v1893_v46, %v4015_v10 }
 0x102   :  { %vm1902_vm4 = vcmp.eq.s32.totalorder %v1897_v0, 1  ;;  %vm1903_vm11 = vcmp.eq.s32.totalorder %v1901_v49, 1 }
 0x196   :  { %v4422_v44 = vpop.f32.mrb[0].mxu0 }
 0x197   :  { %v4427_v2 = vpop.f32.mrb[1].mxu0 }
 0x198   :  { %v128_v45 = vadd.f32 %v4427_v2, %v4422_v44 }
 0x1d1   :  { %v1813_v59 = vpop.f32.mrb[0].mxu1 }
 0x1d2   :  { %v1820_v61 = vsel %vm4753_vm0, %v1813_v59, 0.0  ;;  %v1815_v62 = vpop.f32.mrb[1].mxu1 }
 0x1d3   :  { %v1821_v63 = vsel %vm4753_vm0, %v1815_v62, 0.0 }
 0x1d4   :  { %v1822_v6 = vadd.f32 %v1821_v63, %v1820_v61  ;;  %v3649_v61 = vld [vmem:[%s4732_s5 + $0x8] sm:$0xff] }
 0x1d6   :  { %1823 = vadd.xlane.f32.xlu0 %v1822_v6 }
 0x263   :  { %v1824_v8 = vpop.xlane.xlu0 %1823 }
 0x264   :  { %v1825_v11 = vmul.f32 0.00390625, %v1824_v8 }
 0x266   :  { %v1826_v14 = vsub.f32 %v1813_v59, %v1825_v11  ;;  %v1827_v15 = vsub.f32 %v1815_v62, %v1825_v11 }
 0x268   :  { %v1828_v16 = vmul.f32 %v1826_v14, %v1826_v14  ;;  %v1829_v20 = vmul.f32 %v1827_v15, %v1827_v15 }
 0x26a   :  { %v1830_v21 = vsel %vm4753_vm0, %v1828_v16, 0.0  ;;  %v1831_v22 = vsel %vm4753_vm0, %v1829_v20, 0.0  ;;  %vm1865_vm0 = vcmp.ge.s32.totalorder %v4007_v7, 8 }
 0x26b   :  { %v1832_v23 = vadd.f32 %v1831_v22, %v1830_v21  ;;  %vm1867_vm6 = vmand %vm1865_vm0, %vm1866_vm2  ;;  %vm4795_vm0 = vcmask 1043456   ;;  %vm2183_vm2 = vcmp.lt.s32.totalorder %v4007_v7, 133  ;;  %v1857_v21 = vld [vmem:[%s4732_s5] sm:$0xff] }
 0x26c   :  { %v1868_v53 = vsel %vm1867_vm6, 1, %v3836_v5  ;;  %vm4796_vm5 = vmmov %vm4795_vm0  ;;  %vm2182_vm6 = vcmp.ge.s32.totalorder %v4007_v7, 5 }
 0x26d   :  { %1833 = vadd.xlane.f32.xlu1 %v1832_v23  ;;  %v1872_v62 = vrot.slane %v1868_v53, %v4013_v9  ;;  %v1876_v63 = vrot.slane %v1868_v53, %v4015_v10 }
 0x26f   :  { %vm1877_vm15 = vcmp.eq.s32.totalorder %v1872_v62, 1 }
 0x27e   :  { %1850 = vperm.xlu1 %3800, %v1847_v24  }
 0x2fa   :  { %v1834_v26 = vpop.xlane.xlu1 %1833 }
 0x2fb   :  { %v1835_v29 = vmul.f32 0.00390625, %v1834_v26  ;;  %v3676_v26 = vld [vmem:[%s4732_s5 + $0x38] sm:$0xff] }
 0x2fd   :  { %v1837_v30 = vadd.f32 1e-05, %v1835_v29 }
 0x2fe   :  { %v1851_v36 = vpop.permute.xlu1 %1850 }
 0x2ff   :  { %3803 = vrsqrt.f32 %v1837_v30 }
 0x309   :  { %v3804_v33 = vpop.eup %3803 }
 0x30a   :  { %v1839_v34 = vmul.f32 %v3804_v33, %v1836_v31 }
 0x30c   :  { %1842 = vperm.xlu0 %3799, %v1839_v34  }
 0x38b   :  { %v1843_v35 = vpop.permute.xlu0 %1842 }
 0x38c   :  { %v1845_v38 = vmul.f32 %v1843_v35, %v1826_v14  ;;  %v1846_v40 = vmul.f32 %v1843_v35, %v1827_v15 }
 0x38e   :  { %v1853_v3 = vadd.f32 %v1851_v36, %v1845_v38  ;;  %v1854_v41 = vadd.f32 %v1851_v36, %v1846_v40  ;;  %v3656_v40 = vld [vmem:[%s4732_s5 + $0x10] sm:$0xff] }
 0x390   :  { %v4384_v1 = vmax.f32 %v1853_v3, 0.0  ;;  %v4388_v43 = vmax.f32 %v1854_v41, 0.0 }
 0x392   :  { %2175 = vrot.lane.b32.xlu0 %v4384_v1, %s3844_s3  ;;  %1883 = vrot.lane.b32.xlu1 %v4384_v1, %s3845_s9 }
 0x396   :  { %2282 = vrot.lane.b32.xlu0 %v4384_v1, %s3834_s25  ;;  %1885 = vrot.lane.b32.xlu1 %v4388_v43, %s3845_s9 }
 0x39a   :  { %2374 = vrot.lane.b32.xlu0 %v4384_v1, %s3837_s1  ;;  %1858 = vrot.lane.b32.xlu1 %v4384_v1, %s3846_s8 }
 0x39e   :  { %2466 = vrot.lane.b32.xlu0 %v4384_v1, %s3838_s2  ;;  %1860 = vrot.lane.b32.xlu1 %v4388_v43, %s3846_s8 }
 0x3a2   :  { %2558 = vrot.lane.b32.xlu0 %v4384_v1, %s3839_s26  ;;  %2068 = vrot.lane.b32.xlu1 %v4384_v1, %s3847_s18 }
 0x3a6   :  { %2734 = vrot.lane.b32.xlu0 %v4384_v1, %s3840_s27  ;;  %2070 = vrot.lane.b32.xlu1 %v4388_v43, %s3847_s18 }
 0x3aa   :  { %2826 = vrot.lane.b32.xlu0 %v4384_v1, %s3841_s28  ;;  %2177 = vrot.lane.b32.xlu1 %v4388_v43, %s3844_s3 }
 0x3ae   :  { %2918 = vrot.lane.b32.xlu0 %v4384_v1, %s3842_s29  ;;  %2284 = vrot.lane.b32.xlu1 %v4388_v43, %s3834_s25  ;;  %s3850_s25 = smov 121  }
 0x3b2   :  { %3010 = vrot.lane.b32.xlu0 %v4384_v1, %s3843_s30  ;;  %2376 = vrot.lane.b32.xlu1 %v4388_v43, %s3837_s1  ;;  %s3851_s1 = smov 120  }
 0x3b6   :  { %3102 = vrot.lane.b32.xlu0 %v4384_v1, %s3848_s19  ;;  %2468 = vrot.lane.b32.xlu1 %v4388_v43, %s3838_s2 }
 0x3ba   :  { %3209 = vrot.lane.b32.xlu0 %v4384_v1, %s3849_s20  ;;  %2560 = vrot.lane.b32.xlu1 %v4388_v43, %s3839_s26 }
 0x3be   :  { %3316 = vrot.lane.b32.xlu0 %v4384_v1, %s3850_s25  ;;  %2736 = vrot.lane.b32.xlu1 %v4388_v43, %s3840_s27 }
 0x3c2   :  { %3423 = vrot.lane.b32.xlu0 %v4384_v1, %s3851_s1  ;;  %2828 = vrot.lane.b32.xlu1 %v4388_v43, %s3841_s28 }
 0x3c6   :  { %2920 = vrot.lane.b32.xlu1 %v4388_v43, %s3842_s29 }
 0x3ca   :  { %3012 = vrot.lane.b32.xlu1 %v4388_v43, %s3843_s30 }
 0x3ce   :  { %3104 = vrot.lane.b32.xlu1 %v4388_v43, %s3848_s19 }
 0x3d2   :  { %3211 = vrot.lane.b32.xlu1 %v4388_v43, %s3849_s20 }
 0x3d6   :  { %3318 = vrot.lane.b32.xlu1 %v4388_v43, %s3850_s25 }
 0x3da   :  { %3425 = vrot.lane.b32.xlu1 %v4388_v43, %s3851_s1 }
 0x3e1   :  { %129 = vadd.xlane.f32.xlu0 %v128_v45 }
 0x404   :  { %v1884_v50 = vpop.permute.xlu1 %1883  ;;  %v2176_v31 = vpop.permute.xlu0 %2175 }
 0x408   :  { %v1886_v51 = vpop.permute.xlu1 %1885  ;;  %v2283_v46 = vpop.permute.xlu0 %2282 }
 0x409   :  { %v1888_v55 = vsel %vm1887_vm14, %v1884_v50, %v1886_v51  ;;  %v1889_v56 = vsel %vm1887_vm14, %v1886_v51, %v1884_v50  ;;  %vm4797_vm14 = vcmask 31744  }
 0x40a   :  { %v1904_v57 = vsel %vm1902_vm4, %v1889_v56, 0.0  ;;  %v1905_v59 = vsel %vm1903_vm11, %v1888_v55, 0.0  ;;  %vm2077_vm11 = vmand %vm2075_vm10, %vm2076_vm7  ;;  %vm1862_vm4 = vcmp.lt.s32.totalorder %v4018_v12, 8  ;;  %vm4798_vm10 = vcmask 1043456   ;;  %v3660_v56 = vld [vmem:[%s4732_s5 + $0x18] sm:$0xff] }
 0x40b   :  { %3650 = vmatprep.subr.msk.mxu0 %vm4795_vm0, %v1905_v59  ;;  %vm1878_vm0 = vcmp.eq.s32.totalorder %v1876_v63, 1  ;;  %v2078_v11 = vsel %vm2077_vm11, 1, %v3836_v5  ;;  %vm4799_vm7 = vmmov %vm4798_vm10 }
 0x40c   :  { %3651 = vmatpush1.msk.msra.mxu0 %vm4796_vm5, %v1904_v57  ;;  %v1859_v6 = vpop.permute.xlu1 %1858  ;;  %vm2184_vm5 = vmand %vm2182_vm6, %vm2183_vm2  ;;  %v2082_v22 = vrot.slane %v2078_v11, %v4013_v9  ;;  %v2086_v23 = vrot.slane %v2078_v11, %v4015_v10  ;;  %vm2179_vm6 = vcmp.lt.s32.totalorder %v4018_v12, 5  ;;  %v2375_v57 = vpop.permute.xlu0 %2374 }
 0x40d   :  { %3652 = vmatmul.mubr.msk.f32.vlgmr.msra.gmra.mrb[2].mxu0 %vm4797_vm14, %v3649_v61  ;;  %v2185_v25 = vsel %vm2184_vm5, 1, %v3836_v5  ;;  %vm4802_vm2 = vmmov %vm4799_vm7 }
 0x40e   :  { %2059 = vmatprep.mubr.f32.mxu0 %v3835_v4  ;;  %vm4477_vm11 = vcmp.eq.s32.totalorder %v2082_v22, 1  ;;  %v2189_v29 = vrot.slane %v2185_v25, %v4013_v9  ;;  %v2193_v30 = vrot.slane %v2185_v25, %v4015_v10 }
 0x410   :  { %v1861_v8 = vpop.permute.xlu1 %1860  ;;  %vm2195_vm5 = vcmp.eq.s32.totalorder %v2193_v30, 1 }
 0x411   :  { %v1863_v14 = vsel %vm1862_vm4, %v1859_v6, %v1861_v8  ;;  %v1864_v15 = vsel %vm1862_vm4, %v1861_v8, %v1859_v6  ;;  %vm2088_vm4 = vcmp.eq.s32.totalorder %v2086_v23, 1  ;;  %v2467_v6 = vpop.permute.xlu0 %2466  ;;  %v3664_v8 = vld [vmem:[%s4732_s5 + $0x20] sm:$0xff] }
 0x412   :  { %v1879_v16 = vsel %vm1877_vm15, %v1864_v15, 0.0  ;;  %v1880_v20 = vsel %vm1878_vm0, %v1863_v14, 0.0  ;;  %vm2072_vm15 = vcmp.lt.s32.totalorder %v4018_v12, 6  ;;  %vm2194_vm0 = vcmp.eq.s32.totalorder %v2189_v29, 1 }
 0x413   :  { %3653 = vmatprep.subr.msk.mxu0 %vm4798_vm10, %v1880_v20  ;;  %vm4803_vm10 = vmmov %vm4802_vm2 }
 0x414   :  { %3654 = vmatpush1.msk.msra.mxu0 %vm4799_vm7, %v1879_v16  ;;  %v2069_v24 = vpop.permute.xlu1 %2068  ;;  %vm4804_vm7 = vmmov %vm4797_vm14 }
 0x415   :  { %3655 = vmatmul.mubr.msk.f32.vlgmr.msra.gmra.mrb[2].mxu0 %vm4797_vm14, %v1857_v21  ;;  %vm4805_vm14 = vmmov %vm4802_vm2  ;;  %v2559_v16 = vpop.permute.xlu0 %2558 }
 0x416   :  { %2164 = vmatprep.mubr.f32.mxu0 %v3835_v4 }
 0x418   :  { %v2071_v33 = vpop.permute.xlu1 %2070 }
 0x419   :  { %v2073_v34 = vsel %vm2072_vm15, %v2069_v24, %v2071_v33  ;;  %v2074_v35 = vsel %vm2072_vm15, %v2071_v33, %v2069_v24  ;;  %vm4806_vm15 = vmmov %vm4802_vm2  ;;  %v3672_v24 = vld [vmem:[%s4732_s5 + $0x30] sm:$0xff]  ;;  %v3680_v33 = vld [vmem:[%s4732_s5 + $0x40] sm:$0xff] }
 0x41a   :  { %v2089_v36 = vsel %vm4477_vm11, %v2074_v35, 0.0  ;;  %v2090_v38 = vsel %vm2088_vm4, %v2073_v34, 0.0  ;;  %vm4807_vm11 = vcmp.lt.s32.totalorder %v4018_v12, 4 }
 0x41b   :  { %3657 = vmatprep.subr.msk.mxu0 %vm4802_vm2, %v2090_v38  ;;  %vm4808_vm4 = vmmov %vm4807_vm11 }
 0x41c   :  { %3658 = vmatpush1.msk.msra.mxu0 %vm4803_vm10, %v2089_v36  ;;  %v2178_v3 = vpop.permute.xlu1 %2177 }
 0x41d   :  { %v2180_v41 = vsel %vm2179_vm6, %v2176_v31, %v2178_v3  ;;  %v2181_v45 = vsel %vm2179_vm6, %v2178_v3, %v2176_v31  ;;  %3659 = vmatmul.mubr.msk.f32.vlgmr.msra.gmra.mrb[2].mxu0 %vm4804_vm7, %v3656_v40  ;;  %vm4809_vm6 = vmmov %vm4802_vm2  ;;  %vm4810_vm2 = vcmp.lt.s32.totalorder %v4018_v12, 3 }
 0x41e   :  { %v2196_v0 = vsel %vm2194_vm0, %v2181_v45, 0.0  ;;  %v2197_v49 = vsel %vm2195_vm5, %v2180_v41, 0.0  ;;  %2271 = vmatprep.mubr.f32.mxu0 %v3835_v4  ;;  %vm4811_vm0 = vmmov %vm4804_vm7 }
 0x41f   :  { %3661 = vmatprep.subr.msk.mxu0 %vm4805_vm14, %v2197_v49  ;;  %vm4813_vm5 = vmmov %vm4809_vm6 }
 0x420   :  { %3662 = vmatpush1.msk.msra.mxu0 %vm4806_vm15, %v2196_v0  ;;  %v2285_v50 = vpop.permute.xlu1 %2284  ;;  %vm4814_vm10 = vmmov %vm4810_vm2 }
 0x421   :  { %v2286_v51 = vsel %vm4807_vm11, %v2283_v46, %v2285_v50  ;;  %v2287_v53 = vsel %vm4808_vm4, %v2285_v50, %v2283_v46  ;;  %vm4817_vm7 = vmmov %vm4813_vm5  ;;  %vm4822_vm11 = vnez %v4773_v17  ;;  %v2735_v17 = vpop.permute.xlu0 %2734 }
 0x422   :  { %v2289_v55 = vsel %vm4028_vm9, %v2286_v51, 0.0  ;;  %v2288_v61 = vsel %vm4024_vm8, %v2287_v53, 0.0  ;;  %vm4812_vm9 = vmmov %vm4809_vm6  ;;  %vm4815_vm8 = vcmp.lt.s32.totalorder %v4018_v12, 2 }
 0x423   :  { %3665 = vmatprep.subr.msk.mxu0 %vm4809_vm6, %v2289_v55  ;;  %vm4818_vm14 = vmmov %vm4813_vm5 }
 0x424   :  { %v2377_v59 = vpop.permute.xlu1 %2376  ;;  %vm4819_vm15 = vmmov %vm4815_vm8 }
 0x425   :  { %v2378_v62 = vsel %vm4810_vm2, %v2375_v57, %v2377_v59  ;;  %3663 = vmatmul.mubr.msk.f32.vlgmr.msra.gmra.mrb[2].mxu0 %vm4811_vm0, %v3660_v56  ;;  %v2379_v18 = vsel %vm4814_vm10, %v2377_v59, %v2375_v57  ;;  %vm4823_vm4 = vmmov %vm4813_vm5  ;;  %vm4829_vm10 = vcmp.lt.s32.totalorder %v4018_v12, 127  ;;  %v3692_v56 = vld [vmem:[%s4732_s5 + $0x58] sm:$0xff] }
 0x426   :  { %v2381_v19 = vsel %vm4054_vm12, %v2378_v62, 0.0  ;;  %3666 = vmatpush1.msk.msra.mxu0 %vm4812_vm9, %v2288_v61  ;;  %2363 = vmatprep.mubr.f32.mxu0 %v3835_v4  ;;  %v2380_v32 = vsel %vm4073_vm1, %v2379_v18, 0.0  ;;  %vm4816_vm12 = vmmov %vm4811_vm0  ;;  %vm4820_vm1 = vcmp.lt.s32.totalorder %v4018_v12, 1 }
 0x427   :  { %3669 = vmatprep.subr.msk.mxu0 %vm4813_vm5, %v2381_v19  ;;  %vm4824_vm6 = vmmov %vm4823_vm4 }
 0x428   :  { %v2469_v63 = vpop.permute.xlu1 %2468  ;;  %vm4825_vm2 = vmmov %vm4820_vm1 }
 0x429   :  { %v2470_v11 = vsel %vm4815_vm8, %v2467_v6, %v2469_v63  ;;  %v2471_v20 = vsel %vm4819_vm15, %v2469_v63, %v2467_v6  ;;  %vm4827_vm9 = vmmov %vm4823_vm4  ;;  %v3809_v63 = vld [vmem:[%s4727_s0] sm:$0x3] }
 0x42a   :  { %v2473_v14 = vsel %vm4097_vm3, %v2470_v11, 0.0  ;;  %v2472_v52 = vsel %vm4117_vm13, %v2471_v20, 0.0  ;;  %vm4821_vm3 = vmmov %vm4811_vm0  ;;  %vm4826_vm13 = vnez %v4775_v27  ;;  %v2827_v27 = vpop.permute.xlu0 %2826  ;;  %v3696_v11 = vld [vmem:[%s4732_s5 + $0x60] sm:$0xff] }
 0x42b   :  { %vm4828_vm5 = vmmov %vm4823_vm4 }
 0x42c   :  { %v2561_v15 = vpop.permute.xlu1 %2560  ;;  %vm4830_vm8 = vmmov %vm4811_vm0 }
 0x42d   :  { %3667 = vmatmul.mubr.msk.f32.vlgmr.msra.gmra.mrb[2].mxu0 %vm4816_vm12, %v3664_v8  ;;  %v2562_v21 = vsel %vm4820_vm1, %v2559_v16, %v2561_v15  ;;  %v2563_v23 = vsel %vm4825_vm2, %v2561_v15, %v2559_v16  ;;  %vm4831_vm12 = vnez %v4777_v42  ;;  %vm4834_vm15 = vmmov %vm4829_vm10  ;;  %vm4835_vm1 = vcmp.lt.s32.totalorder %v4018_v12, 126 }
 0x42e   :  { %3670 = vmatpush1.msk.msra.mxu0 %vm4817_vm7, %v2380_v32  ;;  %2455 = vmatprep.mubr.f32.mxu0 %v3835_v4  ;;  %v2565_v22 = vsel %vm4822_vm11, %v2562_v21, 0.0  ;;  %v2564_v60 = vsel %vm4826_vm13, %v2563_v23, 0.0  ;;  %vm4832_vm7 = vmmov %vm4823_vm4  ;;  %v2919_v42 = vpop.permute.xlu0 %2918 }
 0x42f   :  { %3673 = vmatprep.subr.msk.mxu0 %vm4818_vm14, %v2473_v14  ;;  %vm4833_vm14 = vmmov %vm4823_vm4 }
 0x430   :  { %v2737_v25 = vpop.permute.xlu1 %2736  ;;  %vm4837_vm11 = vmmov %vm4811_vm0 }
 0x431   :  { %v2739_v29 = vsel %vm4829_vm10, %v2737_v25, %v2735_v17  ;;  %v2738_v31 = vsel %vm4834_vm15, %v2735_v17, %v2737_v25  ;;  %vm4840_vm2 = vmmov %vm4828_vm5  ;;  %vm4845_vm10 = vnez %v4788_v28  ;;  %v3688_v28 = vld [vmem:[%s4732_s5 + $0x50] sm:$0xff]  ;;  %v3700_v17 = vld [vmem:[%s4732_s5 + $0x68] sm:$0xff] }
 0x432   :  { %v2741_v30 = vsel %vm4831_vm12, %v2739_v29, 0.0  ;;  %v3011_v38 = vpop.permute.xlu0 %3010  ;;  %vm4841_vm13 = vmmov %vm4835_vm1  ;;  %vm3110_vm12 = vcmp.lt.s32.totalorder %v4007_v7, 123 }
 0x435   :  { %3671 = vmatmul.mubr.msk.f32.vlgmr.msra.gmra.mrb[2].mxu0 %vm4821_vm3, %v3668_v39  ;;  %vm4836_vm3 = vnez %v4779_v47  ;;  %v3684_v47 = vld [vmem:[%s4732_s5 + $0x48] sm:$0xff] }
 0x436   :  { %3674 = vmatpush1.msk.msra.mxu0 %vm4823_vm4, %v2472_v52  ;;  %2547 = vmatprep.mubr.f32.mxu0 %v3835_v4  ;;  %v2740_v35 = vsel %vm4836_vm3, %v2738_v31, 0.0  ;;  %vm4838_vm4 = vnez %v4781_v58  ;;  %v3103_v45 = vpop.permute.xlu0 %3102  ;;  %vm4849_vm3 = vcmp.lt.s32.totalorder %v4018_v12, 124 }
 0x437   :  { %3677 = vmatprep.subr.msk.mxu0 %vm4824_vm6, %v2565_v22  ;;  %vm4839_vm6 = vmmov %vm4828_vm5 }
 0x43a   :  { %v3210_v51 = vpop.permute.xlu0 %3209 }
 0x43d   :  { %3675 = vmatmul.mubr.msk.f32.vlgmr.msra.gmra.mrb[2].mxu0 %vm4811_vm0, %v3672_v24  ;;  %vm4842_vm0 = vcmp.lt.s32.totalorder %v4018_v12, 125 }
 0x43e   :  { %3678 = vmatpush1.msk.msra.mxu0 %vm4827_vm9, %v2564_v60  ;;  %2639 = vmatprep.mubr.f32.mxu0 %v3835_v4  ;;  %vm4843_vm9 = vnez %v4784_v13  ;;  %v3317_v57 = vpop.permute.xlu0 %3316 }
 0x43f   :  { %3681 = vmatprep.subr.msk.mxu0 %vm4828_vm5, %v4388_v43  ;;  %v2829_v43 = vpop.permute.xlu1 %2828  ;;  %vm4844_vm5 = vmmov %vm4830_vm8 }
 0x440   :  { %v2831_v34 = vsel %vm4835_vm1, %v2829_v43, %v2827_v27  ;;  %v2830_v40 = vsel %vm4841_vm13, %v2827_v27, %v2829_v43  ;;  %vm4848_vm1 = vmmov %vm4842_vm0  ;;  %vm3217_vm13 = vcmp.lt.s32.totalorder %v4007_v7, 122 }
 0x441   :  { %v2832_v58 = vsel %vm4843_vm9, %v2830_v40, 0.0 }
 0x442   :  { %v3424_v18 = vpop.permute.xlu0 %3423 }
 0x443   :  { %v2921_v36 = vpop.permute.xlu1 %2920 }
 0x444   :  { %v2923_v3 = vsel %vm4842_vm0, %v2921_v36, %v2919_v42  ;;  %v2922_v13 = vsel %vm4848_vm1, %v2919_v42, %v2921_v36  ;;  %vm3324_vm1 = vcmp.lt.s32.totalorder %v3809_v63, 121  ;;  %v3708_v36 = vld [vmem:[%s4732_s5 + $0x78] sm:$0xff] }
 0x445   :  { %3679 = vmatmul.mubr.msk.f32.vlgmr.msra.gmra.mrb[2].mxu0 %vm4830_vm8, %v3676_v26  ;;  %v2925_v41 = vsel %vm4845_vm10, %v2923_v3, 0.0  ;;  %vm3109_vm8 = vcmp.ge.s32.totalorder %v4007_v7, 4294967291 }
 0x446   :  { %3682 = vmatpush1.msk.msra.mxu0 %vm4832_vm7, %v4384_v1  ;;  %2723 = vmatprep.mubr.f32.mxu0 %v3835_v4  ;;  %v2833_v1 = vsel %vm4838_vm4, %v2831_v34, 0.0  ;;  %vm4846_vm7 = vmmov %vm4840_vm2  ;;  %v3704_v34 = vld [vmem:[%s4732_s5 + $0x70] sm:$0xff] }
 0x447   :  { %3685 = vmatprep.subr.msk.mxu0 %vm4833_vm14, %v2741_v30  ;;  %vm4847_vm14 = vmmov %vm4840_vm2  ;;  %v3013_v46 = vpop.permute.xlu1 %3012 }
 0x448   :  { %vm3111_vm15 = vmand %vm3109_vm8, %vm3110_vm12  ;;  %v3015_v0 = vsel %vm4849_vm3, %v3013_v46, %v3011_v38 }
 0x449   :  { %v3112_v49 = vsel %vm3111_vm15, 1, %v3836_v5  ;;  %vm4851_vm4 = vmmov %vm4844_vm5  ;;  %vm3323_vm15 = vcmp.ge.s32.totalorder %v3809_v63, 4294967289 }
 0x44a   :  { %vm4853_vm0 = vmmov %vm4846_vm7  ;;  %v3120_v55 = vrot.slane %v3112_v49, %v4015_v10  ;;  %v3116_v62 = vrot.slane %v3112_v49, %v4013_v9 }
 0x44b   :  { %vm4854_vm9 = vmmov %vm4853_vm0 }
 0x44c   :  { %vm4855_vm8 = vmmov %vm4849_vm3  ;;  %vm3122_vm12 = vcmp.eq.s32.totalorder %v3120_v55, 1 }
 0x44d   :  { %3683 = vmatmul.mubr.msk.f32.vlgmr.msra.gmra.mrb[2].mxu0 %vm4837_vm11, %v3680_v33  ;;  %vm4850_vm11 = vnez %v4790_v37  ;;  %v3105_v37 = vpop.permute.xlu1 %3104  ;;  %vm4858_vm3 = vmmov %vm4853_vm0 }
 0x44e   :  { %3686 = vmatpush1.msk.msra.mxu0 %vm4839_vm6, %v2740_v35  ;;  %2815 = vmatprep.mubr.f32.mxu0 %v3835_v4  ;;  %v2924_v50 = vsel %vm4850_vm11, %v2922_v13, 0.0  ;;  %vm4852_vm6 = vnez %v4792_v48  ;;  %v3014_v48 = vsel %vm4855_vm8, %v3011_v38, %v3013_v46  ;;  %vm4859_vm11 = vmmov %vm4853_vm0  ;;  %v140_v13 = vld [vmem:[%s4733_s6] sm:$0xff] }
 0x44f   :  { %3689 = vmatprep.subr.msk.mxu0 %vm4840_vm2, %v2833_v1  ;;  %v3017_v53 = vsel %vm4852_vm6, %v3015_v0, 0.0  ;;  %vm3216_vm2 = vcmp.ge.s32.totalorder %v4007_v7, 4294967290  ;;  %vm3325_vm6 = vmand %vm3323_vm15, %vm3324_vm1  ;;  %v3551_v0 = vld [vmem:[%s4738_s11] sm:$0xff]  ;;  %s3852_s11 = smov [#allocation2]  }
 0x450   :  { %vm3218_vm10 = vmand %vm3216_vm2, %vm3217_vm13  ;;  %vm3121_vm2 = vcmp.eq.s32.totalorder %v3116_v62, 1  ;;  %v3326_v14 = vsel %vm3325_vm6, 1, %v3836_v5  ;;  %s3571_s3 = sshll.u32 %s3852_s11, 4  ;;  %s3572_s3 = int_to_ptr.vmem [resolvable:$true] %s3571_s3 }
 0x451   :  { %v3219_v59 = vsel %vm3218_vm10, 1, %v3836_v5  ;;  %vm3431_vm10 = vcmp.lt.s32.totalorder %v3809_v63, 120  ;;  %vm4861_vm8 = vmmov %vm4858_vm3  ;;  %v3334_v21 = vrot.slane %v3326_v14, %v4015_v10  ;;  %v3330_v30 = vrot.slane %v3326_v14, %v4013_v9  ;;  %p3815_p1 = scmp.lt.s32.totalorder %s3572_s3, %s3572_s3 }
 0x452   :  { %v3227_v6 = vrot.slane %v3219_v59, %v4015_v10  ;;  %v3223_v16 = vrot.slane %v3219_v59, %v4013_v9  ;;  %v3540_v59 = vld [vmem:[%s4737_s10] sm:$0xff]  ;;  %s3810_s10 = scalar_lea.vmem %s3572_s3, 256 }
 0x453   :  { %vm3336_vm15 = vcmp.eq.s32.totalorder %v3334_v21, 1  ;;  %vm3335_vm6 = vcmp.eq.s32.totalorder %v3330_v30, 1  ;;  %p3811_p0 = scmp.ne.s32.totalorder %s3572_s3, %s3810_s10  ;;  %p3816_p2 = scmp.lt.s32.totalorder %s3810_s10, %s3810_s10 }
 0x454   :  { %vm3229_vm13 = vcmp.eq.s32.totalorder %v3227_v6, 1 }
 0x455   :  { %3687 = vmatmul.mubr.msk.f32.vlgmr.msra.gmra.mrb[2].mxu0 %vm4844_vm5, %v3684_v47  ;;  %vm3106_vm5 = vcmp.lt.s32.totalorder %v4018_v12, 123  ;;  %p3817_p3 = por %p3816_p2, %p3815_p1 }
 0x456   :  { %3690 = vmatpush1.msk.msra.mxu0 %vm4846_vm7, %v2832_v58  ;;  %2907 = vmatprep.mubr.f32.mxu0 %v3835_v4  ;;  %v3108_v7 = vsel %vm3106_vm5, %v3105_v37, %v3103_v45  ;;  %vm4856_vm7 = vnez %v4794_v54  ;;  %v3212_v54 = vpop.permute.xlu1 %3211  ;;  %v3107_v8 = vsel %vm3106_vm5, %v3103_v45, %v3105_v37  ;;  %vm4862_vm5 = vmmov %vm4858_vm3 }
 0x457   :  { %3693 = vmatprep.subr.msk.mxu0 %vm4847_vm14, %v2925_v41  ;;  %v3016_v61 = vsel %vm4856_vm7, %v3014_v48, 0.0  ;;  %vm4857_vm14 = vmmov %vm4851_vm4  ;;  %v3124_v19 = vsel %vm3122_vm12, %v3108_v7, 0.0  ;;  %v3123_v15 = vsel %vm3121_vm2, %v3107_v8, 0.0  ;;  %vm3320_vm12 = vcmp.lt.s32.totalorder %v4018_v12, 121  ;;  %p3818_p4 = pnand %p3817_p3, %p3811_p0 }
 0x45a   :  { %v3319_v22 = vpop.permute.xlu1 %3318 }
 0x45b   :  { %v3322_v25 = vsel %vm3320_vm12, %v3319_v22, %v3317_v57 }
 0x45c   :  { %v3338_v43 = vsel %vm3336_vm15, %v3322_v25, 0.0 }
 0x45d   :  { %3691 = vmatmul.mubr.msk.f32.vlgmr.msra.gmra.mrb[2].mxu0 %vm4851_vm4, %v3688_v28  ;;  %vm3213_vm4 = vcmp.lt.s32.totalorder %v4018_v12, 122  ;;  %v151_v28 = vld [vmem:[%s4734_s7] sm:$0xff] }
 0x45e   :  { %3694 = vmatpush1.msk.msra.mxu0 %vm4853_vm0, %v2924_v50  ;;  %2999 = vmatprep.mubr.f32.mxu0 %v3835_v4  ;;  %v3215_v32 = vsel %vm3213_vm4, %v3212_v54, %v3210_v51  ;;  %vm4860_vm0 = vmmov %vm4857_vm14  ;;  %v3214_v60 = vsel %vm3213_vm4, %v3210_v51, %v3212_v54  ;;  %vm3427_vm4 = vcmp.lt.s32.totalorder %v4018_v12, 120  ;;  %v3426_v33 = vpop.permute.xlu1 %3425 }
 0x45f   :  { %3697 = vmatprep.subr.msk.mxu0 %vm4854_vm9, %v3017_v53  ;;  %v3231_v20 = vsel %vm3229_vm13, %v3215_v32, 0.0  ;;  %vm3430_vm9 = vcmp.ge.s32.totalorder %v3809_v63, 4294967288  ;;  %vm4863_vm1 = vmmov %vm4860_vm0  ;;  %v3429_v42 = vsel %vm3427_vm4, %v3426_v33, %v3424_v18  ;;  %v3428_v12 = vsel %vm3427_vm4, %v3424_v18, %v3426_v33 }
 0x460   :  { %vm3432_vm7 = vmand %vm3430_vm9, %vm3431_vm10 }
 0x461   :  { %vm4865_vm13 = vmmov %vm4860_vm0 }
 0x465   :  { %3695 = vmatmul.mubr.msk.f32.vlgmr.msra.gmra.mrb[2].mxu0 %vm4857_vm14, %v3692_v56  ;;  %vm3228_vm14 = vcmp.eq.s32.totalorder %v3223_v16, 1 }
 0x466   :  { %3698 = vmatpush1.msk.msra.mxu0 %vm4858_vm3, %v3016_v61  ;;  %3091 = vmatprep.mubr.f32.mxu0 %v3835_v4  ;;  %v3230_v29 = vsel %vm3228_vm14, %v3214_v60, 0.0 }
 0x467   :  { %3701 = vmatprep.subr.msk.mxu0 %vm4859_vm11, %v3124_v19  ;;  %vm4864_vm11 = vmmov %vm4858_vm3 }
 0x46d   :  { %3699 = vmatmul.mubr.msk.f32.vlgmr.msra.gmra.mrb[2].mxu0 %vm4860_vm0, %v3696_v11  ;;  %vm4866_vm0 = vmmov %vm4858_vm3 }
 0x46e   :  { %3702 = vmatpush1.msk.msra.mxu0 %vm4861_vm8, %v3123_v15  ;;  %3198 = vmatprep.mubr.f32.mxu0 %v3835_v4  ;;  %v130_v39 = vpop.xlane.xlu0 %129  ;;  %vm4867_vm9 = vmmov %vm4866_vm0 }
 0x46f   :  { %3705 = vmatprep.subr.msk.mxu0 %vm4862_vm5, %v3231_v20  ;;  %v131_v52 = vmul.f32 0.00390625, %v130_v39  ;;  %vm4868_vm8 = vmmov %vm4863_vm1 }
 0x470   :  { %vm4869_vm5 = vmmov %vm4866_vm0 }
 0x471   :  { %v4657_v23 = vsub.f32 %v4422_v44, %v131_v52  ;;  %v4660_v24 = vsub.f32 %v4427_v2, %v131_v52  ;;  %v3433_v2 = vsel %vm3432_vm7, 1, %v3836_v5  ;;  %v3321_v5 = vsel %vm3320_vm12, %v3317_v57, %v3319_v22  ;;  %vm4870_vm12 = vmmov %vm4863_vm1 }
 0x472   :  { %v3441_v31 = vrot.slane %v3433_v2, %v4015_v10  ;;  %v3337_v35 = vsel %vm3335_vm6, %v3321_v5, 0.0  ;;  %v3437_v10 = vrot.slane %v3433_v2, %v4013_v9  ;;  %v3712_v9 = vld [vmem:[%s4732_s5 + $0x80] sm:$0xff] }
 0x473   :  { %v134_v26 = vmul.f32 %v4657_v23, %v4657_v23  ;;  %v135_v44 = vmul.f32 %v4660_v24, %v4660_v24 }
 0x474   :  { %vm3443_vm2 = vcmp.eq.s32.totalorder %v3441_v31, 1  ;;  %vm3442_vm10 = vcmp.eq.s32.totalorder %v3437_v10, 1 }
 0x475   :  { %3703 = vmatmul.mubr.msk.f32.vlgmr.msra.gmra.mrb[2].mxu0 %vm4863_vm1, %v3700_v17  ;;  %v136_v27 = vadd.f32 %v135_v44, %v134_v26  ;;  %v3445_v1 = vsel %vm3443_vm2, %v3429_v42, 0.0  ;;  %v3444_v38 = vsel %vm3442_vm10, %v3428_v12, 0.0 }
 0x476   :  { %3706 = vmatpush1.msk.msra.mxu0 %vm4858_vm3, %v3230_v29  ;;  %3305 = vmatprep.mubr.f32.mxu0 %v3835_v4 }
 0x477   :  { %3709 = vmatprep.subr.msk.mxu0 %vm4864_vm11, %v3338_v43  ;;  %137 = vadd.xlane.f32.xlu0 %v136_v27 }
 0x47d   :  { %3707 = vmatmul.mubr.msk.f32.vlgmr.msra.gmra.mrb[2].mxu0 %vm4865_vm13, %v3704_v34 }
 0x47e   :  { %3710 = vmatpush1.msk.msra.mxu0 %vm4866_vm0, %v3337_v35  ;;  %3412 = vmatprep.mubr.f32.mxu0 %v3835_v4 }
 0x47f   :  { %3713 = vmatprep.subr.msk.mxu0 %vm4867_vm9, %v3445_v1 }
 0x485   :  { %3711 = vmatmul.mubr.msk.f32.vlgmr.msra.gmra.mrb[2].mxu0 %vm4868_vm8, %v3708_v36 }
 0x486   :  { %3714 = vmatpush1.msk.msra.mxu0 %vm4869_vm5, %v3444_v38  ;;  %3519 = vmatprep.mubr.f32.mxu0 %v3835_v4 }
 0x48d   :  { %3715 = vmatmul.mubr.msk.f32.vlgmr.msra.gmra.mrb[2].mxu0 %vm4870_vm12, %v3712_v9 }
 0x504   :  { %v138_v40 = vpop.xlane.xlu0 %137 }
 0x505   :  { %v139_v47 = vmul.f32 0.00390625, %v138_v40 }
 0x507   :  { %v141_v58 = vadd.f32 1e-05, %v139_v47 }
 0x509   :  { %3805 = vrsqrt.f32 %v141_v58 }
 0x513   :  { %v3806_v46 = vpop.eup %3805 }
 0x514   :  { %v143_v4 = vmul.f32 %v3806_v46, %v140_v13 }
 0x560   :  { %v3521_v3 = vpop.f32.mrb[2].mxu0 }
 0x561   :  { %v3523_v41 = vpop.f32.mrb[3].mxu0 }
 0x562   :  { %v3528_v45 = vadd.f32 %v3523_v41, %v3521_v3 }
 0x564   :  { %3529 = vadd.xlane.f32.xlu1 %v3528_v45 }
 0x575   :  { %146 = vperm.xlu1 %3800, %v143_v4  }
 0x579   :  { %154 = vperm.xlu1 %3800, %v151_v28  }
 0x57d   :  { %3554 = vperm.xlu1 %3800, %v3551_v0  }
 0x5f1   :  { %v3530_v49 = vpop.xlane.xlu1 %3529 }
 0x5f2   :  { %v3531_v50 = vmul.f32 0.00390625, %v3530_v49 }
 0x5f4   :  { %v3532_v51 = vsub.f32 %v3521_v3, %v3531_v50  ;;  %v3533_v53 = vsub.f32 %v3523_v41, %v3531_v50 }
 0x5f5   :  { %v147_v19 = vpop.permute.xlu1 %146 }
 0x5f6   :  { %v3534_v55 = vmul.f32 %v3532_v51, %v3532_v51  ;;  %v3535_v37 = vmul.f32 %v3533_v53, %v3533_v53  ;;  %v149_v54 = vmul.f32 %v147_v19, %v4657_v23  ;;  %v150_v18 = vmul.f32 %v147_v19, %v4660_v24 }
 0x5f8   :  { %v3536_v48 = vadd.f32 %v3535_v37, %v3534_v55 }
 0x5f9   :  { %v155_v63 = vpop.permute.xlu1 %154 }
 0x5fa   :  { %3537 = vadd.xlane.f32.xlu0 %v3536_v48  ;;  %v157_v14 = vadd.f32 %v155_v63, %v149_v54  ;;  %v158_v15 = vadd.f32 %v155_v63, %v150_v18 }
 0x5fd   :  { %v3555_v32 = vpop.permute.xlu1 %3554 }
 0x687   :  { %v3538_v56 = vpop.xlane.xlu0 %3537 }
 0x688   :  { %v3539_v7 = vmul.f32 0.00390625, %v3538_v56 }
 0x68a   :  { %v3541_v57 = vadd.f32 1e-05, %v3539_v7 }
 0x68c   :  { %3807 = vrsqrt.f32 %v3541_v57 }
 0x696   :  { %v3808_v61 = vpop.eup %3807 }
 0x697   :  { %v3543_v62 = vmul.f32 %v3808_v61, %v3540_v59 }
 0x699   :  { %3546 = vperm.xlu0 %3799, %v3543_v62  }
 0x718   :  { %v3547_v6 = vpop.permute.xlu0 %3546 }
 0x719   :  { %v3549_v8 = vmul.f32 %v3547_v6, %v3532_v51  ;;  %v3550_v11 = vmul.f32 %v3547_v6, %v3533_v53 }
 0x71b   :  { %v3557_v16 = vadd.f32 %v3555_v32, %v3549_v8  ;;  %v3558_v20 = vadd.f32 %v3555_v32, %v3550_v11 }
 0x71d   :  { %v3559_v39 = vadd.f32 %v3557_v16, %v157_v14  ;;  %v3560_v21 = vadd.f32 %v3558_v20, %v158_v15 }
 0x71f   :  { %v3561_v52 = vmax.f32 %v3559_v39, 0.0  ;;  %v3562_v22 = vmax.f32 %v3560_v21, 0.0 }
 0x721   :  { %3563 = vst [vmem:[#allocation2] sm:$0xff] %v3561_v52  ;;  %3564 = vst [vmem:[#allocation2 + $0x8] sm:$0xff] %v3562_v22 }
 0x722   :  { %3821 = shalt.err (!%p3818_p4)
}
 0x723   :  { %s3822_s18 = scalar_lea.hbm %s4739_s12, 256 }
 0x724   :  { %p3823_p5 = scmp.ne.s32.totalorder %s4739_s12, %s3822_s18  ;;  %p3826_p6 = scmp.lt.u32.totalorder %s3822_s18, %s4739_s12 }
 0x726   :  { %p3828_p7 = pnand %p3826_p6, %p3823_p5 }
 0x728   :  { %3831 = shalt.err (!%p3828_p7)
}
 0x729   :  { %3574 = dma.vmem_to_hbm [thread:$0]  %s3572_s3, 256, %s4739_s12, [#allocation3]  }
 0x72a   :  { %3832 = dma.done.wait [#allocation3], 256  }
 0x72b   :  { %3833 = vsyncadd [#allocation3], 4294967040 }
 0x72c   :  { %3578 = vsyncpa [#allocation3], 1 }

</bundles_post_ra>
